<compile_context>
chip_gen: v6e
topology: v6e:2x2x1
jax: 0.10.0
libtpu: 0.0.40
codegen_flags: <defaults>
</compile_context>

<pallas_src>
import math
import functools

import jax
import jax.numpy as jnp
from jax.experimental import pallas as pl
from jax.experimental.pallas import tpu as pltpu

VMEM = pl.BlockSpec(memory_space=pltpu.MemorySpace.VMEM)
LN_EPS = 1e-6  # TF DeepSC LayerNorm eps (PyTorch nn.LayerNorm default is 1e-5)


# ----------------------------------------------------------------------------
# In-kernel helpers (traced inside the Pallas kernels)
# ----------------------------------------------------------------------------

def _ln(x, g, b):
    mu = jnp.mean(x, axis=-1, keepdims=True)
    var = jnp.mean(jnp.square(x - mu), axis=-1, keepdims=True)
    return (x - mu) * jax.lax.rsqrt(var + LN_EPS) * g + b


def _mha(xq, xkv, wqkv_ref, bqkv_ref, wo_ref, bo_ref, layer, num_heads,
         batch, sq, sk, causal):
    """Multi-head attention on flattened (rows, D) activations.

    Weights are stored per-head ((L*3*H, D, Dh), (L*H, Dh, D)), so head separation
    happens in the weight layout instead of lane-slicing activations. The output
    projection is folded into the head loop (sum over per-head row blocks of Wo).
    """
    dh = wqkv_ref.shape[-1]
    scale = 1.0 / math.sqrt(dh)
    xq_b = xq.astype(jnp.bfloat16)
    xkv_b = xkv.astype(jnp.bfloat16)
    if causal:
        row = jax.lax.broadcasted_iota(jnp.int32, (sq, sk), 0)
        col = jax.lax.broadcasted_iota(jnp.int32, (sq, sk), 1)
        nbias = jnp.where(col > row, -1e9, 0.0).astype(jnp.float32)
    acc = None
    for h in range(num_heads):  # static unroll; num_heads is small
        iq = (layer * 3 + 0) * num_heads + h
        ik = (layer * 3 + 1) * num_heads + h
        iv = (layer * 3 + 2) * num_heads + h
        q = (jnp.dot(xq_b, wqkv_ref[iq], preferred_element_type=jnp.float32)
             + bqkv_ref[iq]).reshape(batch, sq, dh)
        k = (jnp.dot(xkv_b, wqkv_ref[ik], preferred_element_type=jnp.float32)
             + bqkv_ref[ik]).reshape(batch, sk, dh)
        v = (jnp.dot(xkv_b, wqkv_ref[iv], preferred_element_type=jnp.float32)
             + bqkv_ref[iv]).reshape(batch, sk, dh)
        s = jnp.einsum('bqd,bkd->bqk', q.astype(jnp.bfloat16), k.astype(jnp.bfloat16),
                       preferred_element_type=jnp.float32) * scale
        if causal:
            s = s + nbias
        m = jnp.max(s, axis=-1, keepdims=True)
        p = jnp.exp(s - m)
        p = p * pl.reciprocal(jnp.sum(p, axis=-1, keepdims=True), approx=True)
        oh = jnp.einsum('bqk,bkd->bqd', p.astype(jnp.bfloat16), v.astype(jnp.bfloat16),
                        preferred_element_type=jnp.float32)
        contrib = jnp.dot(oh.reshape(batch * sq, dh).astype(jnp.bfloat16),
                          wo_ref[layer * num_heads + h],
                          preferred_element_type=jnp.float32)
        acc = contrib if acc is None else acc + contrib
    return acc + bo_ref[layer]


def _dense(x, w, b, relu=False):
    y = jnp.dot(x.astype(jnp.bfloat16), w, preferred_element_type=jnp.float32) + b
    return jnp.maximum(y, 0.0) if relu else y


# ----------------------------------------------------------------------------
# Fused Pallas kernels (2 per forward pass)
# ----------------------------------------------------------------------------

def _encoder_channel_kernel(
        x_ref, noise_ref,
        wqkv_ref, bqkv_ref, wo_ref, bo_ref, ln1_ref,
        wff1_ref, bff1_ref, wff2_ref, bff2_ref, ln2_ref,
        cew1_ref, ceb1_ref, cew2_ref, ceb2_ref,
        cdw1_ref, cdb1_ref, cdw2_ref, cdb2_ref, cdln_ref,
        ce_out_ref, ch_out_ref, mem_ref,
        *, num_layers, num_heads, batch, seq):
    x = x_ref[...]                                       # (B*S, D) f32
    for l in range(num_layers):                          # all encoder layers fused
        attn = _mha(x, x, wqkv_ref, bqkv_ref, wo_ref, bo_ref, l, num_heads,
                    batch, seq, seq, causal=False)
        out1 = _ln(x + attn, ln1_ref[2 * l], ln1_ref[2 * l + 1])
        ff = _dense(out1, wff1_ref[l], bff1_ref[l], relu=True)
        ff = _dense(ff, wff2_ref[l], bff2_ref[l])
        x = _ln(out1 + ff, ln2_ref[2 * l], ln2_ref[2 * l + 1])
    # ChannelEncoder: Dense(256, relu) -> Dense(16)
    h = _dense(x, cew1_ref[...], ceb1_ref[...], relu=True)
    ce = _dense(h, cew2_ref[...], ceb2_ref[...])
    # AWGN channel: y = x + n (n ~ N(0, n_std^2) precomputed in JAX glue)
    ch = ce + noise_ref[...]
    # ChannelDecoder: Dense(D, relu) -> Dense(D) + residual LayerNorm
    h1 = _dense(ch, cdw1_ref[...], cdb1_ref[...], relu=True)
    h2 = _dense(h1, cdw2_ref[...], cdb2_ref[...])
    ce_out_ref[...] = ce
    ch_out_ref[...] = ch
    mem_ref[...] = _ln(h1 + h2, cdln_ref[0], cdln_ref[1])


def _decoder_stack_kernel(
        x_ref, mem_ref,
        w1qkv_ref, b1qkv_ref, w1o_ref, b1o_ref, ln1_ref,
        w2qkv_ref, b2qkv_ref, w2o_ref, b2o_ref, ln2_ref,
        wff1_ref, bff1_ref, wff2_ref, bff2_ref, ln3_ref,
        wfin_ref, bfin_ref,
        pred_ref,
        *, num_layers, num_heads, batch, seq_t, seq_s):
    x = x_ref[...]        # (B*St, D) f32
    mem = mem_ref[...]    # (B*S, D) f32
    for l in range(num_layers):                          # all decoder layers fused
        a1 = _mha(x, x, w1qkv_ref, b1qkv_ref, w1o_ref, b1o_ref, l, num_heads,
                  batch, seq_t, seq_t, causal=True)
        o1 = _ln(x + a1, ln1_ref[2 * l], ln1_ref[2 * l + 1])
        a2 = _mha(o1, mem, w2qkv_ref, b2qkv_ref, w2o_ref, b2o_ref, l, num_heads,
                  batch, seq_t, seq_s, causal=False)
        o2 = _ln(o1 + a2, ln2_ref[2 * l], ln2_ref[2 * l + 1])
        ff = _dense(o2, wff1_ref[l], bff1_ref[l], relu=True)
        ff = _dense(ff, wff2_ref[l], bff2_ref[l])
        x = _ln(o2 + ff, ln3_ref[2 * l], ln3_ref[2 * l + 1])
    # final vocab projection fused into the decoder kernel
    pred_ref[...] = _dense(x, wfin_ref[...], bfin_ref[...])


# ----------------------------------------------------------------------------
# Python wrappers (pallas_call plumbing)
# ----------------------------------------------------------------------------

def encoder_channel_stack(x2d, noise2d, p, *, num_layers, num_heads, batch, seq):
    BS, D = x2d.shape
    C = noise2d.shape[-1]
    ins = [x2d, noise2d,
           p["enc_wqkv"], p["enc_bqkv"], p["enc_wo"], p["enc_bo"], p["enc_ln1"],
           p["enc_wff1"], p["enc_bff1"], p["enc_wff2"], p["enc_bff2"], p["enc_ln2"],
           p["ce_w1"], p["ce_b1"], p["ce_w2"], p["ce_b2"],
           p["cd_w1"], p["cd_b1"], p["cd_w2"], p["cd_b2"], p["cd_ln"]]
    return pl.pallas_call(
        functools.partial(_encoder_channel_kernel, num_layers=num_layers,
                          num_heads=num_heads, batch=batch, seq=seq),
        out_shape=(jax.ShapeDtypeStruct((BS, C), jnp.float32),
                   jax.ShapeDtypeStruct((BS, C), jnp.float32),
                   jax.ShapeDtypeStruct((BS, D), jnp.float32)),
        in_specs=[VMEM] * len(ins),
        out_specs=(VMEM, VMEM, VMEM),
        compiler_params=pltpu.CompilerParams(vmem_limit_bytes=32 * 1024 * 1024),
    )(*ins)


def decoder_stack(x2d, mem2d, p, *, num_layers, num_heads, batch, seq_t, seq_s):
    BT, D = x2d.shape
    V = p["final_w"].shape[1]
    ins = [x2d, mem2d,
           p["dec_w1qkv"], p["dec_b1qkv"], p["dec_w1o"], p["dec_b1o"], p["dec_ln1"],
           p["dec_w2qkv"], p["dec_b2qkv"], p["dec_w2o"], p["dec_b2o"], p["dec_ln2"],
           p["dec_wff1"], p["dec_bff1"], p["dec_wff2"], p["dec_bff2"], p["dec_ln3"],
           p["final_w"], p["final_b"]]
    return pl.pallas_call(
        functools.partial(_decoder_stack_kernel, num_layers=num_layers,
                          num_heads=num_heads, batch=batch, seq_t=seq_t, seq_s=seq_s),
        out_shape=jax.ShapeDtypeStruct((BT, V), jnp.float32),
        in_specs=[VMEM] * len(ins),
        out_specs=VMEM,
        compiler_params=pltpu.CompilerParams(vmem_limit_bytes=32 * 1024 * 1024),
    )(*ins)


# ----------------------------------------------------------------------------
# Model forward (JAX glue: embedding gather + positional encoding only)
# ----------------------------------------------------------------------------

@functools.lru_cache(maxsize=None)
def positional_encoding(seq_len, d_model):
    pos = jnp.arange(seq_len, dtype=jnp.float32)[:, None]
    i = jnp.arange(d_model, dtype=jnp.float32)[None, :]
    rates = 1.0 / jnp.power(10000.0, (2.0 * jnp.floor(i / 2.0)) / d_model)
    ang = pos * rates
    pe = jnp.where(jnp.arange(d_model)[None, :] % 2 == 0, jnp.sin(ang), jnp.cos(ang))
    return pe.astype(jnp.float32)


def transceiver_forward(params, data, target, noise, cfg):
    """data/target: int32 token ids (B, S). Returns (pred, channel_enc_out, channel_out)."""
    D, H = cfg["d_model"], cfg["num_heads"]
    B, S = data.shape
    St = target.shape[1]
    C = noise.shape[-1]

    # --- semantic encoder + channel encoder + AWGN + channel decoder (one kernel) ---
    enc = jnp.take(params["enc_embed"], data, axis=0) * math.sqrt(D)
    enc = enc + positional_encoding(S, D)[None]
    ce_out, ch_out, mem = encoder_channel_stack(
        enc.reshape(B * S, D), noise.reshape(B * S, C), params,
        num_layers=cfg["enc_num_layer"], num_heads=H, batch=B, seq=S)

    # --- semantic decoder + final vocab projection (one kernel) ---
    dec = jnp.take(params["dec_embed"], target, axis=0) * math.sqrt(D)
    dec = dec + positional_encoding(St, D)[None]
    pred = decoder_stack(dec.reshape(B * St, D), mem, params,
                         num_layers=cfg["dec_num_layer"], num_heads=H,
                         batch=B, seq_t=St, seq_s=S)
    return (pred.reshape(B, St, -1), ce_out.reshape(B, S, C), ch_out.reshape(B, S, C))


# ----------------------------------------------------------------------------
# Deterministic parameter initialization (stacked per-layer, per-head layout)
# ----------------------------------------------------------------------------

class KeyGen:
    def __init__(self, key):
        self._key = key

    def __call__(self):
        self._key, sub = jax.random.split(self._key)
        return sub


def init_params(kg, cfg):
    D, V, F, H = cfg["d_model"], cfg["vocab_size"], cfg["d_ff"], cfg["num_heads"]
    Dh = D // H
    Le, Ld = cfg["enc_num_layer"], cfg["dec_num_layer"]

    def nrm(shape, fan_in):  # bf16 matmul weights
        return (jax.random.normal(kg(), shape) / math.sqrt(fan_in)).astype(jnp.bfloat16)

    def attn(L, prefix):
        return {
            prefix + "qkv": nrm((L * 3 * H, D, Dh), D),
            prefix.replace("w", "b") + "qkv": jnp.zeros((L * 3 * H, 1, Dh), jnp.float32),
            prefix + "o": nrm((L * H, Dh, D), D),
            prefix.replace("w", "b") + "o": jnp.zeros((L, 1, D), jnp.float32),
        }

    def ln_pair(L):  # [2l] = gamma, [2l+1] = beta
        g = jnp.ones((L, 1, 1, D), jnp.float32)
        b = jnp.zeros((L, 1, 1, D), jnp.float32)
        return jnp.concatenate([g, b], axis=1).reshape(L * 2, 1, D)

    def ffn(L, prefix):
        return {
            prefix + "ff1": nrm((L, D, F), D),
            prefix.replace("w", "b") + "ff1": jnp.zeros((L, 1, F), jnp.float32),
            prefix + "ff2": nrm((L, F, D), F),
            prefix.replace("w", "b") + "ff2": jnp.zeros((L, 1, D), jnp.float32),
        }

    p = {
        "enc_embed": (jax.random.normal(kg(), (V, D)) * 0.02).astype(jnp.float32),
        "dec_embed": (jax.random.normal(kg(), (V, D)) * 0.02).astype(jnp.float32),
    }
    p.update(attn(Le, "enc_w"))
    p["enc_ln1"] = ln_pair(Le)
    p.update(ffn(Le, "enc_w"))
    p["enc_ln2"] = ln_pair(Le)

    p.update(attn(Ld, "dec_w1"))
    p["dec_ln1"] = ln_pair(Ld)
    p.update(attn(Ld, "dec_w2"))
    p["dec_ln2"] = ln_pair(Ld)
    p.update(ffn(Ld, "dec_w"))
    p["dec_ln3"] = ln_pair(Ld)

    # Channel encoder (D -> 256 relu -> 16) and decoder (16 -> D relu -> D, residual LN)
    p["ce_w1"], p["ce_b1"] = nrm((D, 256), D), jnp.zeros((1, 256), jnp.float32)
    p["ce_w2"], p["ce_b2"] = nrm((256, 16), 256), jnp.zeros((1, 16), jnp.float32)
    p["cd_w1"], p["cd_b1"] = nrm((16, D), 16), jnp.zeros((1, D), jnp.float32)
    p["cd_w2"], p["cd_b2"] = nrm((D, D), D), jnp.zeros((1, D), jnp.float32)
    p["cd_ln"] = jnp.concatenate([jnp.ones((1, 1, D), jnp.float32),
                                  jnp.zeros((1, 1, D), jnp.float32)], axis=0)

    p["final_w"], p["final_b"] = nrm((D, V), D), jnp.zeros((1, V), jnp.float32)
    return p


# ----------------------------------------------------------------------------
# Main
# ----------------------------------------------------------------------------

if __name__ == "__main__":
    cfg = dict(vocab_size=32, d_model=32, num_heads=2, d_ff=64,
               enc_num_layer=2, dec_num_layer=2)
    B, S = 2, 8
    n_std = 0.1

    key = jax.random.PRNGKey(0)
    kg = KeyGen(key)
    params = init_params(kg, cfg)

    data = jax.random.randint(kg(), (B, S), 0, cfg["vocab_size"], dtype=jnp.int32)
    target = jax.random.randint(kg(), (B, S), 0, cfg["vocab_size"], dtype=jnp.int32)
    noise = (n_std * jax.random.normal(kg(), (B, S, 16))).astype(jnp.float32)

    pred, channel_enc_out, channel_out = transceiver_forward(params, data, target, noise, cfg)
    jax.block_until_ready((pred, channel_enc_out, channel_out))

    assert pred.shape == (B, S, cfg["vocab_size"])
    assert channel_enc_out.shape == (B, S, 16)
    assert channel_out.shape == (B, S, 16)
    assert bool(jnp.all(jnp.isfinite(pred)))
    print("KERNEL_OK")
</pallas_src>

<mosaic_0001>
module attributes {stable_mosaic.version = 11 : i64} {
  func.func @_encoder_channel_kernel(%arg0: memref<16x32xf32, #tpu.memory_space<vmem>>, %arg1: memref<16x16xf32, #tpu.memory_space<vmem>>, %arg2: memref<12x32x16xbf16, #tpu.memory_space<vmem>>, %arg3: memref<12x1x16xf32, #tpu.memory_space<vmem>>, %arg4: memref<4x16x32xbf16, #tpu.memory_space<vmem>>, %arg5: memref<2x1x32xf32, #tpu.memory_space<vmem>>, %arg6: memref<4x1x32xf32, #tpu.memory_space<vmem>>, %arg7: memref<2x32x64xbf16, #tpu.memory_space<vmem>>, %arg8: memref<2x1x64xf32, #tpu.memory_space<vmem>>, %arg9: memref<2x64x32xbf16, #tpu.memory_space<vmem>>, %arg10: memref<2x1x32xf32, #tpu.memory_space<vmem>>, %arg11: memref<4x1x32xf32, #tpu.memory_space<vmem>>, %arg12: memref<32x256xbf16, #tpu.memory_space<vmem>>, %arg13: memref<1x256xf32, #tpu.memory_space<vmem>>, %arg14: memref<256x16xbf16, #tpu.memory_space<vmem>>, %arg15: memref<1x16xf32, #tpu.memory_space<vmem>>, %arg16: memref<16x32xbf16, #tpu.memory_space<vmem>>, %arg17: memref<1x32xf32, #tpu.memory_space<vmem>>, %arg18: memref<32x32xbf16, #tpu.memory_space<vmem>>, %arg19: memref<1x32xf32, #tpu.memory_space<vmem>>, %arg20: memref<2x1x32xf32, #tpu.memory_space<vmem>>, %arg21: memref<16x16xf32, #tpu.memory_space<vmem>>, %arg22: memref<16x16xf32, #tpu.memory_space<vmem>>, %arg23: memref<16x32xf32, #tpu.memory_space<vmem>>) attributes {dimension_semantics = [], scalar_prefetch = 0 : i64, scratch_operands = 0 : i64, tpu.core_type = #tpu.core_type<tc>} {
    %c0 = arith.constant 0 : index
    %c0_0 = arith.constant 0 : index
    %0 = vector.load %arg0[%c0, %c0_0] : memref<16x32xf32, #tpu.memory_space<vmem>>, vector<16x32xf32>
    %1 = arith.truncf %0 : vector<16x32xf32> to vector<16x32xbf16>
    %2 = arith.truncf %0 : vector<16x32xf32> to vector<16x32xbf16>
    %c0_1 = arith.constant 0 : index
    %c0_2 = arith.constant 0 : index
    %c0_3 = arith.constant 0 : index
    %3 = vector.load %arg2[%c0_1, %c0_2, %c0_3] : memref<12x32x16xbf16, #tpu.memory_space<vmem>>, vector<1x32x16xbf16>
    %4 = vector.shape_cast %3 : vector<1x32x16xbf16> to vector<32x16xbf16>
    %cst = arith.constant dense<0.000000e+00> : vector<16x16xf32>
    %5 = tpu.matmul %1, %4, %cst {dimension_numbers = #tpu.dot_dimension_numbers<[1], [0], [0], [1], [0, 0, 1, 1], [], []>} : vector<16x32xbf16>, vector<32x16xbf16>, vector<16x16xf32> -> vector<16x16xf32>
    %c0_4 = arith.constant 0 : index
    %c0_5 = arith.constant 0 : index
    %c0_6 = arith.constant 0 : index
    %6 = vector.load %arg3[%c0_4, %c0_5, %c0_6] : memref<12x1x16xf32, #tpu.memory_space<vmem>>, vector<1x1x16xf32>
    %7 = vector.shape_cast %6 : vector<1x1x16xf32> to vector<1x16xf32>
    %8 = vector.broadcast %7 : vector<1x16xf32> to vector<16x16xf32>
    %9 = arith.addf %5, %8 : vector<16x16xf32>
    %10 = vector.shape_cast %9 : vector<16x16xf32> to vector<2x8x16xf32>
    %c2 = arith.constant 2 : index
    %c0_7 = arith.constant 0 : index
    %c0_8 = arith.constant 0 : index
    %11 = vector.load %arg2[%c2, %c0_7, %c0_8] : memref<12x32x16xbf16, #tpu.memory_space<vmem>>, vector<1x32x16xbf16>
    %12 = vector.shape_cast %11 : vector<1x32x16xbf16> to vector<32x16xbf16>
    %cst_9 = arith.constant dense<0.000000e+00> : vector<16x16xf32>
    %13 = tpu.matmul %2, %12, %cst_9 {dimension_numbers = #tpu.dot_dimension_numbers<[1], [0], [0], [1], [0, 0, 1, 1], [], []>} : vector<16x32xbf16>, vector<32x16xbf16>, vector<16x16xf32> -> vector<16x16xf32>
    %c2_10 = arith.constant 2 : index
    %c0_11 = arith.constant 0 : index
    %c0_12 = arith.constant 0 : index
    %14 = vector.load %arg3[%c2_10, %c0_11, %c0_12] : memref<12x1x16xf32, #tpu.memory_space<vmem>>, vector<1x1x16xf32>
    %15 = vector.shape_cast %14 : vector<1x1x16xf32> to vector<1x16xf32>
    %16 = vector.broadcast %15 : vector<1x16xf32> to vector<16x16xf32>
    %17 = arith.addf %13, %16 : vector<16x16xf32>
    %18 = vector.shape_cast %17 : vector<16x16xf32> to vector<2x8x16xf32>
    %c4 = arith.constant 4 : index
    %c0_13 = arith.constant 0 : index
    %c0_14 = arith.constant 0 : index
    %19 = vector.load %arg2[%c4, %c0_13, %c0_14] : memref<12x32x16xbf16, #tpu.memory_space<vmem>>, vector<1x32x16xbf16>
    %20 = vector.shape_cast %19 : vector<1x32x16xbf16> to vector<32x16xbf16>
    %cst_15 = arith.constant dense<0.000000e+00> : vector<16x16xf32>
    %21 = tpu.matmul %2, %20, %cst_15 {dimension_numbers = #tpu.dot_dimension_numbers<[1], [0], [0], [1], [0, 0, 1, 1], [], []>} : vector<16x32xbf16>, vector<32x16xbf16>, vector<16x16xf32> -> vector<16x16xf32>
    %c4_16 = arith.constant 4 : index
    %c0_17 = arith.constant 0 : index
    %c0_18 = arith.constant 0 : index
    %22 = vector.load %arg3[%c4_16, %c0_17, %c0_18] : memref<12x1x16xf32, #tpu.memory_space<vmem>>, vector<1x1x16xf32>
    %23 = vector.shape_cast %22 : vector<1x1x16xf32> to vector<1x16xf32>
    %24 = vector.broadcast %23 : vector<1x16xf32> to vector<16x16xf32>
    %25 = arith.addf %21, %24 : vector<16x16xf32>
    %26 = vector.shape_cast %25 : vector<16x16xf32> to vector<2x8x16xf32>
    %27 = arith.truncf %10 : vector<2x8x16xf32> to vector<2x8x16xbf16>
    %28 = arith.truncf %18 : vector<2x8x16xf32> to vector<2x8x16xbf16>
    "tpu.trace_start"() <{level = 10 : i32, message = "bqd,bkd->bqk"}> : () -> ()
    %cst_19 = arith.constant dense<0.000000e+00> : vector<2x8x8xf32>
    %29 = tpu.matmul %27, %28, %cst_19 {dimension_numbers = #tpu.dot_dimension_numbers<[2], [2], [1], [1], [0, 0, 0, 1, 1, 1], [0], [0]>} : vector<2x8x16xbf16>, vector<2x8x16xbf16>, vector<2x8x8xf32> -> vector<2x8x8xf32>
    "tpu.trace_stop"() : () -> ()
    %cst_20 = arith.constant 2.500000e-01 : f32
    %30 = vector.broadcast %cst_20 : f32 to vector<2x8x8xf32>
    %31 = arith.mulf %29, %30 : vector<2x8x8xf32>
    %cst_21 = arith.constant dense<0xFF800000> : vector<2x8xf32>
    %32 = vector.multi_reduction <maximumf>, %31, %cst_21 [2] : vector<2x8x8xf32> to vector<2x8xf32>
    %33 = vector.shape_cast %32 : vector<2x8xf32> to vector<2x8x1xf32>
    %34 = vector.broadcast %33 : vector<2x8x1xf32> to vector<2x8x8xf32>
    %35 = arith.subf %31, %34 : vector<2x8x8xf32>
    %36 = math.exp %35 : vector<2x8x8xf32>
    %cst_22 = arith.constant dense<0.000000e+00> : vector<2x8xf32>
    %37 = vector.multi_reduction <add>, %36, %cst_22 [2] : vector<2x8x8xf32> to vector<2x8xf32>
    %38 = vector.shape_cast %37 : vector<2x8xf32> to vector<2x8x1xf32>
    %39 = tpu.reciprocal %38 {approx = true} : vector<2x8x1xf32> -> vector<2x8x1xf32>
    %40 = vector.broadcast %39 : vector<2x8x1xf32> to vector<2x8x8xf32>
    %41 = arith.mulf %36, %40 : vector<2x8x8xf32>
    %42 = arith.truncf %41 : vector<2x8x8xf32> to vector<2x8x8xbf16>
    %43 = arith.truncf %26 : vector<2x8x16xf32> to vector<2x8x16xbf16>
    "tpu.trace_start"() <{level = 10 : i32, message = "bqk,bkd->bqd"}> : () -> ()
    %cst_23 = arith.constant dense<0.000000e+00> : vector<2x8x16xf32>
    %44 = tpu.matmul %42, %43, %cst_23 {dimension_numbers = #tpu.dot_dimension_numbers<[2], [1], [1], [2], [0, 0, 0, 1, 1, 2], [0], [0]>} : vector<2x8x8xbf16>, vector<2x8x16xbf16>, vector<2x8x16xf32> -> vector<2x8x16xf32>
    "tpu.trace_stop"() : () -> ()
    %45 = vector.shape_cast %44 : vector<2x8x16xf32> to vector<16x16xf32>
    %46 = arith.truncf %45 : vector<16x16xf32> to vector<16x16xbf16>
    %c0_24 = arith.constant 0 : index
    %c0_25 = arith.constant 0 : index
    %c0_26 = arith.constant 0 : index
    %47 = vector.load %arg4[%c0_24, %c0_25, %c0_26] : memref<4x16x32xbf16, #tpu.memory_space<vmem>>, vector<1x16x32xbf16>
    %48 = vector.shape_cast %47 : vector<1x16x32xbf16> to vector<16x32xbf16>
    %cst_27 = arith.constant dense<0.000000e+00> : vector<16x32xf32>
    %49 = tpu.matmul %46, %48, %cst_27 {dimension_numbers = #tpu.dot_dimension_numbers<[1], [0], [0], [1], [0, 0, 1, 1], [], []>} : vector<16x16xbf16>, vector<16x32xbf16>, vector<16x32xf32> -> vector<16x32xf32>
    %c1 = arith.constant 1 : index
    %c0_28 = arith.constant 0 : index
    %c0_29 = arith.constant 0 : index
    %50 = vector.load %arg2[%c1, %c0_28, %c0_29] : memref<12x32x16xbf16, #tpu.memory_space<vmem>>, vector<1x32x16xbf16>
    %51 = vector.shape_cast %50 : vector<1x32x16xbf16> to vector<32x16xbf16>
    %cst_30 = arith.constant dense<0.000000e+00> : vector<16x16xf32>
    %52 = tpu.matmul %1, %51, %cst_30 {dimension_numbers = #tpu.dot_dimension_numbers<[1], [0], [0], [1], [0, 0, 1, 1], [], []>} : vector<16x32xbf16>, vector<32x16xbf16>, vector<16x16xf32> -> vector<16x16xf32>
    %c1_31 = arith.constant 1 : index
    %c0_32 = arith.constant 0 : index
    %c0_33 = arith.constant 0 : index
    %53 = vector.load %arg3[%c1_31, %c0_32, %c0_33] : memref<12x1x16xf32, #tpu.memory_space<vmem>>, vector<1x1x16xf32>
    %54 = vector.shape_cast %53 : vector<1x1x16xf32> to vector<1x16xf32>
    %55 = vector.broadcast %54 : vector<1x16xf32> to vector<16x16xf32>
    %56 = arith.addf %52, %55 : vector<16x16xf32>
    %57 = vector.shape_cast %56 : vector<16x16xf32> to vector<2x8x16xf32>
    %c3 = arith.constant 3 : index
    %c0_34 = arith.constant 0 : index
    %c0_35 = arith.constant 0 : index
    %58 = vector.load %arg2[%c3, %c0_34, %c0_35] : memref<12x32x16xbf16, #tpu.memory_space<vmem>>, vector<1x32x16xbf16>
    %59 = vector.shape_cast %58 : vector<1x32x16xbf16> to vector<32x16xbf16>
    %cst_36 = arith.constant dense<0.000000e+00> : vector<16x16xf32>
    %60 = tpu.matmul %2, %59, %cst_36 {dimension_numbers = #tpu.dot_dimension_numbers<[1], [0], [0], [1], [0, 0, 1, 1], [], []>} : vector<16x32xbf16>, vector<32x16xbf16>, vector<16x16xf32> -> vector<16x16xf32>
    %c3_37 = arith.constant 3 : index
    %c0_38 = arith.constant 0 : index
    %c0_39 = arith.constant 0 : index
    %61 = vector.load %arg3[%c3_37, %c0_38, %c0_39] : memref<12x1x16xf32, #tpu.memory_space<vmem>>, vector<1x1x16xf32>
    %62 = vector.shape_cast %61 : vector<1x1x16xf32> to vector<1x16xf32>
    %63 = vector.broadcast %62 : vector<1x16xf32> to vector<16x16xf32>
    %64 = arith.addf %60, %63 : vector<16x16xf32>
    %65 = vector.shape_cast %64 : vector<16x16xf32> to vector<2x8x16xf32>
    %c5 = arith.constant 5 : index
    %c0_40 = arith.constant 0 : index
    %c0_41 = arith.constant 0 : index
    %66 = vector.load %arg2[%c5, %c0_40, %c0_41] : memref<12x32x16xbf16, #tpu.memory_space<vmem>>, vector<1x32x16xbf16>
    %67 = vector.shape_cast %66 : vector<1x32x16xbf16> to vector<32x16xbf16>
    %cst_42 = arith.constant dense<0.000000e+00> : vector<16x16xf32>
    %68 = tpu.matmul %2, %67, %cst_42 {dimension_numbers = #tpu.dot_dimension_numbers<[1], [0], [0], [1], [0, 0, 1, 1], [], []>} : vector<16x32xbf16>, vector<32x16xbf16>, vector<16x16xf32> -> vector<16x16xf32>
    %c5_43 = arith.constant 5 : index
    %c0_44 = arith.constant 0 : index
    %c0_45 = arith.constant 0 : index
    %69 = vector.load %arg3[%c5_43, %c0_44, %c0_45] : memref<12x1x16xf32, #tpu.memory_space<vmem>>, vector<1x1x16xf32>
    %70 = vector.shape_cast %69 : vector<1x1x16xf32> to vector<1x16xf32>
    %71 = vector.broadcast %70 : vector<1x16xf32> to vector<16x16xf32>
    %72 = arith.addf %68, %71 : vector<16x16xf32>
    %73 = vector.shape_cast %72 : vector<16x16xf32> to vector<2x8x16xf32>
    %74 = arith.truncf %57 : vector<2x8x16xf32> to vector<2x8x16xbf16>
    %75 = arith.truncf %65 : vector<2x8x16xf32> to vector<2x8x16xbf16>
    "tpu.trace_start"() <{level = 10 : i32, message = "bqd,bkd->bqk"}> : () -> ()
    %cst_46 = arith.constant dense<0.000000e+00> : vector<2x8x8xf32>
    %76 = tpu.matmul %74, %75, %cst_46 {dimension_numbers = #tpu.dot_dimension_numbers<[2], [2], [1], [1], [0, 0, 0, 1, 1, 1], [0], [0]>} : vector<2x8x16xbf16>, vector<2x8x16xbf16>, vector<2x8x8xf32> -> vector<2x8x8xf32>
    "tpu.trace_stop"() : () -> ()
    %cst_47 = arith.constant 2.500000e-01 : f32
    %77 = vector.broadcast %cst_47 : f32 to vector<2x8x8xf32>
    %78 = arith.mulf %76, %77 : vector<2x8x8xf32>
    %cst_48 = arith.constant dense<0xFF800000> : vector<2x8xf32>
    %79 = vector.multi_reduction <maximumf>, %78, %cst_48 [2] : vector<2x8x8xf32> to vector<2x8xf32>
    %80 = vector.shape_cast %79 : vector<2x8xf32> to vector<2x8x1xf32>
    %81 = vector.broadcast %80 : vector<2x8x1xf32> to vector<2x8x8xf32>
    %82 = arith.subf %78, %81 : vector<2x8x8xf32>
    %83 = math.exp %82 : vector<2x8x8xf32>
    %cst_49 = arith.constant dense<0.000000e+00> : vector<2x8xf32>
    %84 = vector.multi_reduction <add>, %83, %cst_49 [2] : vector<2x8x8xf32> to vector<2x8xf32>
    %85 = vector.shape_cast %84 : vector<2x8xf32> to vector<2x8x1xf32>
    %86 = tpu.reciprocal %85 {approx = true} : vector<2x8x1xf32> -> vector<2x8x1xf32>
    %87 = vector.broadcast %86 : vector<2x8x1xf32> to vector<2x8x8xf32>
    %88 = arith.mulf %83, %87 : vector<2x8x8xf32>
    %89 = arith.truncf %88 : vector<2x8x8xf32> to vector<2x8x8xbf16>
    %90 = arith.truncf %73 : vector<2x8x16xf32> to vector<2x8x16xbf16>
    "tpu.trace_start"() <{level = 10 : i32, message = "bqk,bkd->bqd"}> : () -> ()
    %cst_50 = arith.constant dense<0.000000e+00> : vector<2x8x16xf32>
    %91 = tpu.matmul %89, %90, %cst_50 {dimension_numbers = #tpu.dot_dimension_numbers<[2], [1], [1], [2], [0, 0, 0, 1, 1, 2], [0], [0]>} : vector<2x8x8xbf16>, vector<2x8x16xbf16>, vector<2x8x16xf32> -> vector<2x8x16xf32>
    "tpu.trace_stop"() : () -> ()
    %92 = vector.shape_cast %91 : vector<2x8x16xf32> to vector<16x16xf32>
    %93 = arith.truncf %92 : vector<16x16xf32> to vector<16x16xbf16>
    %c1_51 = arith.constant 1 : index
    %c0_52 = arith.constant 0 : index
    %c0_53 = arith.constant 0 : index
    %94 = vector.load %arg4[%c1_51, %c0_52, %c0_53] : memref<4x16x32xbf16, #tpu.memory_space<vmem>>, vector<1x16x32xbf16>
    %95 = vector.shape_cast %94 : vector<1x16x32xbf16> to vector<16x32xbf16>
    %cst_54 = arith.constant dense<0.000000e+00> : vector<16x32xf32>
    %96 = tpu.matmul %93, %95, %cst_54 {dimension_numbers = #tpu.dot_dimension_numbers<[1], [0], [0], [1], [0, 0, 1, 1], [], []>} : vector<16x16xbf16>, vector<16x32xbf16>, vector<16x32xf32> -> vector<16x32xf32>
    %97 = arith.addf %49, %96 : vector<16x32xf32>
    %c0_55 = arith.constant 0 : index
    %c0_56 = arith.constant 0 : index
    %c0_57 = arith.constant 0 : index
    %98 = vector.load %arg5[%c0_55, %c0_56, %c0_57] : memref<2x1x32xf32, #tpu.memory_space<vmem>>, vector<1x1x32xf32>
    %99 = vector.shape_cast %98 : vector<1x1x32xf32> to vector<1x32xf32>
    %100 = vector.broadcast %99 : vector<1x32xf32> to vector<16x32xf32>
    %101 = arith.addf %97, %100 : vector<16x32xf32>
    %102 = arith.addf %0, %101 : vector<16x32xf32>
    %c0_58 = arith.constant 0 : index
    %c0_59 = arith.constant 0 : index
    %c0_60 = arith.constant 0 : index
    %103 = vector.load %arg6[%c0_58, %c0_59, %c0_60] : memref<4x1x32xf32, #tpu.memory_space<vmem>>, vector<1x1x32xf32>
    %104 = vector.shape_cast %103 : vector<1x1x32xf32> to vector<1x32xf32>
    %c1_61 = arith.constant 1 : index
    %c0_62 = arith.constant 0 : index
    %c0_63 = arith.constant 0 : index
    %105 = vector.load %arg6[%c1_61, %c0_62, %c0_63] : memref<4x1x32xf32, #tpu.memory_space<vmem>>, vector<1x1x32xf32>
    %106 = vector.shape_cast %105 : vector<1x1x32xf32> to vector<1x32xf32>
    %cst_64 = arith.constant dense<0.000000e+00> : vector<16xf32>
    %107 = vector.multi_reduction <add>, %102, %cst_64 [1] : vector<16x32xf32> to vector<16xf32>
    %108 = vector.shape_cast %107 : vector<16xf32> to vector<16x1xf32>
    %cst_65 = arith.constant 3.200000e+01 : f32
    %109 = vector.broadcast %cst_65 : f32 to vector<16x1xf32>
    %110 = arith.divf %108, %109 : vector<16x1xf32>
    %111 = vector.broadcast %110 : vector<16x1xf32> to vector<16x32xf32>
    %112 = arith.subf %102, %111 : vector<16x32xf32>
    %113 = arith.mulf %112, %112 : vector<16x32xf32>
    %cst_66 = arith.constant dense<0.000000e+00> : vector<16xf32>
    %114 = vector.multi_reduction <add>, %113, %cst_66 [1] : vector<16x32xf32> to vector<16xf32>
    %115 = vector.shape_cast %114 : vector<16xf32> to vector<16x1xf32>
    %cst_67 = arith.constant 3.200000e+01 : f32
    %116 = vector.broadcast %cst_67 : f32 to vector<16x1xf32>
    %117 = arith.divf %115, %116 : vector<16x1xf32>
    %118 = vector.broadcast %110 : vector<16x1xf32> to vector<16x32xf32>
    %119 = arith.subf %102, %118 : vector<16x32xf32>
    %cst_68 = arith.constant 9.99999997E-7 : f32
    %120 = vector.broadcast %cst_68 : f32 to vector<16x1xf32>
    %121 = arith.addf %117, %120 : vector<16x1xf32>
    %122 = math.rsqrt %121 : vector<16x1xf32>
    %123 = vector.broadcast %122 : vector<16x1xf32> to vector<16x32xf32>
    %124 = arith.mulf %119, %123 : vector<16x32xf32>
    %125 = vector.broadcast %104 : vector<1x32xf32> to vector<16x32xf32>
    %126 = arith.mulf %124, %125 : vector<16x32xf32>
    %127 = vector.broadcast %106 : vector<1x32xf32> to vector<16x32xf32>
    %128 = arith.addf %126, %127 : vector<16x32xf32>
    %c0_69 = arith.constant 0 : index
    %c0_70 = arith.constant 0 : index
    %c0_71 = arith.constant 0 : index
    %129 = vector.load %arg7[%c0_69, %c0_70, %c0_71] : memref<2x32x64xbf16, #tpu.memory_space<vmem>>, vector<1x32x64xbf16>
    %130 = vector.shape_cast %129 : vector<1x32x64xbf16> to vector<32x64xbf16>
    %c0_72 = arith.constant 0 : index
    %c0_73 = arith.constant 0 : index
    %c0_74 = arith.constant 0 : index
    %131 = vector.load %arg8[%c0_72, %c0_73, %c0_74] : memref<2x1x64xf32, #tpu.memory_space<vmem>>, vector<1x1x64xf32>
    %132 = vector.shape_cast %131 : vector<1x1x64xf32> to vector<1x64xf32>
    %133 = arith.truncf %128 : vector<16x32xf32> to vector<16x32xbf16>
    %cst_75 = arith.constant dense<0.000000e+00> : vector<16x64xf32>
    %134 = tpu.matmul %133, %130, %cst_75 {dimension_numbers = #tpu.dot_dimension_numbers<[1], [0], [0], [1], [0, 0, 1, 1], [], []>} : vector<16x32xbf16>, vector<32x64xbf16>, vector<16x64xf32> -> vector<16x64xf32>
    %135 = vector.broadcast %132 : vector<1x64xf32> to vector<16x64xf32>
    %136 = arith.addf %134, %135 : vector<16x64xf32>
    %cst_76 = arith.constant 0.000000e+00 : f32
    %137 = vector.broadcast %cst_76 : f32 to vector<16x64xf32>
    %138 = arith.maximumf %136, %137 : vector<16x64xf32>
    %c0_77 = arith.constant 0 : index
    %c0_78 = arith.constant 0 : index
    %c0_79 = arith.constant 0 : index
    %139 = vector.load %arg9[%c0_77, %c0_78, %c0_79] : memref<2x64x32xbf16, #tpu.memory_space<vmem>>, vector<1x64x32xbf16>
    %140 = vector.shape_cast %139 : vector<1x64x32xbf16> to vector<64x32xbf16>
    %c0_80 = arith.constant 0 : index
    %c0_81 = arith.constant 0 : index
    %c0_82 = arith.constant 0 : index
    %141 = vector.load %arg10[%c0_80, %c0_81, %c0_82] : memref<2x1x32xf32, #tpu.memory_space<vmem>>, vector<1x1x32xf32>
    %142 = vector.shape_cast %141 : vector<1x1x32xf32> to vector<1x32xf32>
    %143 = arith.truncf %138 : vector<16x64xf32> to vector<16x64xbf16>
    %cst_83 = arith.constant dense<0.000000e+00> : vector<16x32xf32>
    %144 = tpu.matmul %143, %140, %cst_83 {dimension_numbers = #tpu.dot_dimension_numbers<[1], [0], [0], [1], [0, 0, 1, 1], [], []>} : vector<16x64xbf16>, vector<64x32xbf16>, vector<16x32xf32> -> vector<16x32xf32>
    %145 = vector.broadcast %142 : vector<1x32xf32> to vector<16x32xf32>
    %146 = arith.addf %144, %145 : vector<16x32xf32>
    %147 = arith.addf %128, %146 : vector<16x32xf32>
    %c0_84 = arith.constant 0 : index
    %c0_85 = arith.constant 0 : index
    %c0_86 = arith.constant 0 : index
    %148 = vector.load %arg11[%c0_84, %c0_85, %c0_86] : memref<4x1x32xf32, #tpu.memory_space<vmem>>, vector<1x1x32xf32>
    %149 = vector.shape_cast %148 : vector<1x1x32xf32> to vector<1x32xf32>
    %c1_87 = arith.constant 1 : index
    %c0_88 = arith.constant 0 : index
    %c0_89 = arith.constant 0 : index
    %150 = vector.load %arg11[%c1_87, %c0_88, %c0_89] : memref<4x1x32xf32, #tpu.memory_space<vmem>>, vector<1x1x32xf32>
    %151 = vector.shape_cast %150 : vector<1x1x32xf32> to vector<1x32xf32>
    %cst_90 = arith.constant dense<0.000000e+00> : vector<16xf32>
    %152 = vector.multi_reduction <add>, %147, %cst_90 [1] : vector<16x32xf32> to vector<16xf32>
    %153 = vector.shape_cast %152 : vector<16xf32> to vector<16x1xf32>
    %cst_91 = arith.constant 3.200000e+01 : f32
    %154 = vector.broadcast %cst_91 : f32 to vector<16x1xf32>
    %155 = arith.divf %153, %154 : vector<16x1xf32>
    %156 = vector.broadcast %155 : vector<16x1xf32> to vector<16x32xf32>
    %157 = arith.subf %147, %156 : vector<16x32xf32>
    %158 = arith.mulf %157, %157 : vector<16x32xf32>
    %cst_92 = arith.constant dense<0.000000e+00> : vector<16xf32>
    %159 = vector.multi_reduction <add>, %158, %cst_92 [1] : vector<16x32xf32> to vector<16xf32>
    %160 = vector.shape_cast %159 : vector<16xf32> to vector<16x1xf32>
    %cst_93 = arith.constant 3.200000e+01 : f32
    %161 = vector.broadcast %cst_93 : f32 to vector<16x1xf32>
    %162 = arith.divf %160, %161 : vector<16x1xf32>
    %163 = vector.broadcast %155 : vector<16x1xf32> to vector<16x32xf32>
    %164 = arith.subf %147, %163 : vector<16x32xf32>
    %cst_94 = arith.constant 9.99999997E-7 : f32
    %165 = vector.broadcast %cst_94 : f32 to vector<16x1xf32>
    %166 = arith.addf %162, %165 : vector<16x1xf32>
    %167 = math.rsqrt %166 : vector<16x1xf32>
    %168 = vector.broadcast %167 : vector<16x1xf32> to vector<16x32xf32>
    %169 = arith.mulf %164, %168 : vector<16x32xf32>
    %170 = vector.broadcast %149 : vector<1x32xf32> to vector<16x32xf32>
    %171 = arith.mulf %169, %170 : vector<16x32xf32>
    %172 = vector.broadcast %151 : vector<1x32xf32> to vector<16x32xf32>
    %173 = arith.addf %171, %172 : vector<16x32xf32>
    %174 = arith.truncf %173 : vector<16x32xf32> to vector<16x32xbf16>
    %175 = arith.truncf %173 : vector<16x32xf32> to vector<16x32xbf16>
    %c6 = arith.constant 6 : index
    %c0_95 = arith.constant 0 : index
    %c0_96 = arith.constant 0 : index
    %176 = vector.load %arg2[%c6, %c0_95, %c0_96] : memref<12x32x16xbf16, #tpu.memory_space<vmem>>, vector<1x32x16xbf16>
    %177 = vector.shape_cast %176 : vector<1x32x16xbf16> to vector<32x16xbf16>
    %cst_97 = arith.constant dense<0.000000e+00> : vector<16x16xf32>
    %178 = tpu.matmul %174, %177, %cst_97 {dimension_numbers = #tpu.dot_dimension_numbers<[1], [0], [0], [1], [0, 0, 1, 1], [], []>} : vector<16x32xbf16>, vector<32x16xbf16>, vector<16x16xf32> -> vector<16x16xf32>
    %c6_98 = arith.constant 6 : index
    %c0_99 = arith.constant 0 : index
    %c0_100 = arith.constant 0 : index
    %179 = vector.load %arg3[%c6_98, %c0_99, %c0_100] : memref<12x1x16xf32, #tpu.memory_space<vmem>>, vector<1x1x16xf32>
    %180 = vector.shape_cast %179 : vector<1x1x16xf32> to vector<1x16xf32>
    %181 = vector.broadcast %180 : vector<1x16xf32> to vector<16x16xf32>
    %182 = arith.addf %178, %181 : vector<16x16xf32>
    %183 = vector.shape_cast %182 : vector<16x16xf32> to vector<2x8x16xf32>
    %c8 = arith.constant 8 : index
    %c0_101 = arith.constant 0 : index
    %c0_102 = arith.constant 0 : index
    %184 = vector.load %arg2[%c8, %c0_101, %c0_102] : memref<12x32x16xbf16, #tpu.memory_space<vmem>>, vector<1x32x16xbf16>
    %185 = vector.shape_cast %184 : vector<1x32x16xbf16> to vector<32x16xbf16>
    %cst_103 = arith.constant dense<0.000000e+00> : vector<16x16xf32>
    %186 = tpu.matmul %175, %185, %cst_103 {dimension_numbers = #tpu.dot_dimension_numbers<[1], [0], [0], [1], [0, 0, 1, 1], [], []>} : vector<16x32xbf16>, vector<32x16xbf16>, vector<16x16xf32> -> vector<16x16xf32>
    %c8_104 = arith.constant 8 : index
    %c0_105 = arith.constant 0 : index
    %c0_106 = arith.constant 0 : index
    %187 = vector.load %arg3[%c8_104, %c0_105, %c0_106] : memref<12x1x16xf32, #tpu.memory_space<vmem>>, vector<1x1x16xf32>
    %188 = vector.shape_cast %187 : vector<1x1x16xf32> to vector<1x16xf32>
    %189 = vector.broadcast %188 : vector<1x16xf32> to vector<16x16xf32>
    %190 = arith.addf %186, %189 : vector<16x16xf32>
    %191 = vector.shape_cast %190 : vector<16x16xf32> to vector<2x8x16xf32>
    %c10 = arith.constant 10 : index
    %c0_107 = arith.constant 0 : index
    %c0_108 = arith.constant 0 : index
    %192 = vector.load %arg2[%c10, %c0_107, %c0_108] : memref<12x32x16xbf16, #tpu.memory_space<vmem>>, vector<1x32x16xbf16>
    %193 = vector.shape_cast %192 : vector<1x32x16xbf16> to vector<32x16xbf16>
    %cst_109 = arith.constant dense<0.000000e+00> : vector<16x16xf32>
    %194 = tpu.matmul %175, %193, %cst_109 {dimension_numbers = #tpu.dot_dimension_numbers<[1], [0], [0], [1], [0, 0, 1, 1], [], []>} : vector<16x32xbf16>, vector<32x16xbf16>, vector<16x16xf32> -> vector<16x16xf32>
    %c10_110 = arith.constant 10 : index
    %c0_111 = arith.constant 0 : index
    %c0_112 = arith.constant 0 : index
    %195 = vector.load %arg3[%c10_110, %c0_111, %c0_112] : memref<12x1x16xf32, #tpu.memory_space<vmem>>, vector<1x1x16xf32>
    %196 = vector.shape_cast %195 : vector<1x1x16xf32> to vector<1x16xf32>
    %197 = vector.broadcast %196 : vector<1x16xf32> to vector<16x16xf32>
    %198 = arith.addf %194, %197 : vector<16x16xf32>
    %199 = vector.shape_cast %198 : vector<16x16xf32> to vector<2x8x16xf32>
    %200 = arith.truncf %183 : vector<2x8x16xf32> to vector<2x8x16xbf16>
    %201 = arith.truncf %191 : vector<2x8x16xf32> to vector<2x8x16xbf16>
    "tpu.trace_start"() <{level = 10 : i32, message = "bqd,bkd->bqk"}> : () -> ()
    %cst_113 = arith.constant dense<0.000000e+00> : vector<2x8x8xf32>
    %202 = tpu.matmul %200, %201, %cst_113 {dimension_numbers = #tpu.dot_dimension_numbers<[2], [2], [1], [1], [0, 0, 0, 1, 1, 1], [0], [0]>} : vector<2x8x16xbf16>, vector<2x8x16xbf16>, vector<2x8x8xf32> -> vector<2x8x8xf32>
    "tpu.trace_stop"() : () -> ()
    %cst_114 = arith.constant 2.500000e-01 : f32
    %203 = vector.broadcast %cst_114 : f32 to vector<2x8x8xf32>
    %204 = arith.mulf %202, %203 : vector<2x8x8xf32>
    %cst_115 = arith.constant dense<0xFF800000> : vector<2x8xf32>
    %205 = vector.multi_reduction <maximumf>, %204, %cst_115 [2] : vector<2x8x8xf32> to vector<2x8xf32>
    %206 = vector.shape_cast %205 : vector<2x8xf32> to vector<2x8x1xf32>
    %207 = vector.broadcast %206 : vector<2x8x1xf32> to vector<2x8x8xf32>
    %208 = arith.subf %204, %207 : vector<2x8x8xf32>
    %209 = math.exp %208 : vector<2x8x8xf32>
    %cst_116 = arith.constant dense<0.000000e+00> : vector<2x8xf32>
    %210 = vector.multi_reduction <add>, %209, %cst_116 [2] : vector<2x8x8xf32> to vector<2x8xf32>
    %211 = vector.shape_cast %210 : vector<2x8xf32> to vector<2x8x1xf32>
    %212 = tpu.reciprocal %211 {approx = true} : vector<2x8x1xf32> -> vector<2x8x1xf32>
    %213 = vector.broadcast %212 : vector<2x8x1xf32> to vector<2x8x8xf32>
    %214 = arith.mulf %209, %213 : vector<2x8x8xf32>
    %215 = arith.truncf %214 : vector<2x8x8xf32> to vector<2x8x8xbf16>
    %216 = arith.truncf %199 : vector<2x8x16xf32> to vector<2x8x16xbf16>
    "tpu.trace_start"() <{level = 10 : i32, message = "bqk,bkd->bqd"}> : () -> ()
    %cst_117 = arith.constant dense<0.000000e+00> : vector<2x8x16xf32>
    %217 = tpu.matmul %215, %216, %cst_117 {dimension_numbers = #tpu.dot_dimension_numbers<[2], [1], [1], [2], [0, 0, 0, 1, 1, 2], [0], [0]>} : vector<2x8x8xbf16>, vector<2x8x16xbf16>, vector<2x8x16xf32> -> vector<2x8x16xf32>
    "tpu.trace_stop"() : () -> ()
    %218 = vector.shape_cast %217 : vector<2x8x16xf32> to vector<16x16xf32>
    %219 = arith.truncf %218 : vector<16x16xf32> to vector<16x16xbf16>
    %c2_118 = arith.constant 2 : index
    %c0_119 = arith.constant 0 : index
    %c0_120 = arith.constant 0 : index
    %220 = vector.load %arg4[%c2_118, %c0_119, %c0_120] : memref<4x16x32xbf16, #tpu.memory_space<vmem>>, vector<1x16x32xbf16>
    %221 = vector.shape_cast %220 : vector<1x16x32xbf16> to vector<16x32xbf16>
    %cst_121 = arith.constant dense<0.000000e+00> : vector<16x32xf32>
    %222 = tpu.matmul %219, %221, %cst_121 {dimension_numbers = #tpu.dot_dimension_numbers<[1], [0], [0], [1], [0, 0, 1, 1], [], []>} : vector<16x16xbf16>, vector<16x32xbf16>, vector<16x32xf32> -> vector<16x32xf32>
    %c7 = arith.constant 7 : index
    %c0_122 = arith.constant 0 : index
    %c0_123 = arith.constant 0 : index
    %223 = vector.load %arg2[%c7, %c0_122, %c0_123] : memref<12x32x16xbf16, #tpu.memory_space<vmem>>, vector<1x32x16xbf16>
    %224 = vector.shape_cast %223 : vector<1x32x16xbf16> to vector<32x16xbf16>
    %cst_124 = arith.constant dense<0.000000e+00> : vector<16x16xf32>
    %225 = tpu.matmul %174, %224, %cst_124 {dimension_numbers = #tpu.dot_dimension_numbers<[1], [0], [0], [1], [0, 0, 1, 1], [], []>} : vector<16x32xbf16>, vector<32x16xbf16>, vector<16x16xf32> -> vector<16x16xf32>
    %c7_125 = arith.constant 7 : index
    %c0_126 = arith.constant 0 : index
    %c0_127 = arith.constant 0 : index
    %226 = vector.load %arg3[%c7_125, %c0_126, %c0_127] : memref<12x1x16xf32, #tpu.memory_space<vmem>>, vector<1x1x16xf32>
    %227 = vector.shape_cast %226 : vector<1x1x16xf32> to vector<1x16xf32>
    %228 = vector.broadcast %227 : vector<1x16xf32> to vector<16x16xf32>
    %229 = arith.addf %225, %228 : vector<16x16xf32>
    %230 = vector.shape_cast %229 : vector<16x16xf32> to vector<2x8x16xf32>
    %c9 = arith.constant 9 : index
    %c0_128 = arith.constant 0 : index
    %c0_129 = arith.constant 0 : index
    %231 = vector.load %arg2[%c9, %c0_128, %c0_129] : memref<12x32x16xbf16, #tpu.memory_space<vmem>>, vector<1x32x16xbf16>
    %232 = vector.shape_cast %231 : vector<1x32x16xbf16> to vector<32x16xbf16>
    %cst_130 = arith.constant dense<0.000000e+00> : vector<16x16xf32>
    %233 = tpu.matmul %175, %232, %cst_130 {dimension_numbers = #tpu.dot_dimension_numbers<[1], [0], [0], [1], [0, 0, 1, 1], [], []>} : vector<16x32xbf16>, vector<32x16xbf16>, vector<16x16xf32> -> vector<16x16xf32>
    %c9_131 = arith.constant 9 : index
    %c0_132 = arith.constant 0 : index
    %c0_133 = arith.constant 0 : index
    %234 = vector.load %arg3[%c9_131, %c0_132, %c0_133] : memref<12x1x16xf32, #tpu.memory_space<vmem>>, vector<1x1x16xf32>
    %235 = vector.shape_cast %234 : vector<1x1x16xf32> to vector<1x16xf32>
    %236 = vector.broadcast %235 : vector<1x16xf32> to vector<16x16xf32>
    %237 = arith.addf %233, %236 : vector<16x16xf32>
    %238 = vector.shape_cast %237 : vector<16x16xf32> to vector<2x8x16xf32>
    %c11 = arith.constant 11 : index
    %c0_134 = arith.constant 0 : index
    %c0_135 = arith.constant 0 : index
    %239 = vector.load %arg2[%c11, %c0_134, %c0_135] : memref<12x32x16xbf16, #tpu.memory_space<vmem>>, vector<1x32x16xbf16>
    %240 = vector.shape_cast %239 : vector<1x32x16xbf16> to vector<32x16xbf16>
    %cst_136 = arith.constant dense<0.000000e+00> : vector<16x16xf32>
    %241 = tpu.matmul %175, %240, %cst_136 {dimension_numbers = #tpu.dot_dimension_numbers<[1], [0], [0], [1], [0, 0, 1, 1], [], []>} : vector<16x32xbf16>, vector<32x16xbf16>, vector<16x16xf32> -> vector<16x16xf32>
    %c11_137 = arith.constant 11 : index
    %c0_138 = arith.constant 0 : index
    %c0_139 = arith.constant 0 : index
    %242 = vector.load %arg3[%c11_137, %c0_138, %c0_139] : memref<12x1x16xf32, #tpu.memory_space<vmem>>, vector<1x1x16xf32>
    %243 = vector.shape_cast %242 : vector<1x1x16xf32> to vector<1x16xf32>
    %244 = vector.broadcast %243 : vector<1x16xf32> to vector<16x16xf32>
    %245 = arith.addf %241, %244 : vector<16x16xf32>
    %246 = vector.shape_cast %245 : vector<16x16xf32> to vector<2x8x16xf32>
    %247 = arith.truncf %230 : vector<2x8x16xf32> to vector<2x8x16xbf16>
    %248 = arith.truncf %238 : vector<2x8x16xf32> to vector<2x8x16xbf16>
    "tpu.trace_start"() <{level = 10 : i32, message = "bqd,bkd->bqk"}> : () -> ()
    %cst_140 = arith.constant dense<0.000000e+00> : vector<2x8x8xf32>
    %249 = tpu.matmul %247, %248, %cst_140 {dimension_numbers = #tpu.dot_dimension_numbers<[2], [2], [1], [1], [0, 0, 0, 1, 1, 1], [0], [0]>} : vector<2x8x16xbf16>, vector<2x8x16xbf16>, vector<2x8x8xf32> -> vector<2x8x8xf32>
    "tpu.trace_stop"() : () -> ()
    %cst_141 = arith.constant 2.500000e-01 : f32
    %250 = vector.broadcast %cst_141 : f32 to vector<2x8x8xf32>
    %251 = arith.mulf %249, %250 : vector<2x8x8xf32>
    %cst_142 = arith.constant dense<0xFF800000> : vector<2x8xf32>
    %252 = vector.multi_reduction <maximumf>, %251, %cst_142 [2] : vector<2x8x8xf32> to vector<2x8xf32>
    %253 = vector.shape_cast %252 : vector<2x8xf32> to vector<2x8x1xf32>
    %254 = vector.broadcast %253 : vector<2x8x1xf32> to vector<2x8x8xf32>
    %255 = arith.subf %251, %254 : vector<2x8x8xf32>
    %256 = math.exp %255 : vector<2x8x8xf32>
    %cst_143 = arith.constant dense<0.000000e+00> : vector<2x8xf32>
    %257 = vector.multi_reduction <add>, %256, %cst_143 [2] : vector<2x8x8xf32> to vector<2x8xf32>
    %258 = vector.shape_cast %257 : vector<2x8xf32> to vector<2x8x1xf32>
    %259 = tpu.reciprocal %258 {approx = true} : vector<2x8x1xf32> -> vector<2x8x1xf32>
    %260 = vector.broadcast %259 : vector<2x8x1xf32> to vector<2x8x8xf32>
    %261 = arith.mulf %256, %260 : vector<2x8x8xf32>
    %262 = arith.truncf %261 : vector<2x8x8xf32> to vector<2x8x8xbf16>
    %263 = arith.truncf %246 : vector<2x8x16xf32> to vector<2x8x16xbf16>
    "tpu.trace_start"() <{level = 10 : i32, message = "bqk,bkd->bqd"}> : () -> ()
    %cst_144 = arith.constant dense<0.000000e+00> : vector<2x8x16xf32>
    %264 = tpu.matmul %262, %263, %cst_144 {dimension_numbers = #tpu.dot_dimension_numbers<[2], [1], [1], [2], [0, 0, 0, 1, 1, 2], [0], [0]>} : vector<2x8x8xbf16>, vector<2x8x16xbf16>, vector<2x8x16xf32> -> vector<2x8x16xf32>
    "tpu.trace_stop"() : () -> ()
    %265 = vector.shape_cast %264 : vector<2x8x16xf32> to vector<16x16xf32>
    %266 = arith.truncf %265 : vector<16x16xf32> to vector<16x16xbf16>
    %c3_145 = arith.constant 3 : index
    %c0_146 = arith.constant 0 : index
    %c0_147 = arith.constant 0 : index
    %267 = vector.load %arg4[%c3_145, %c0_146, %c0_147] : memref<4x16x32xbf16, #tpu.memory_space<vmem>>, vector<1x16x32xbf16>
    %268 = vector.shape_cast %267 : vector<1x16x32xbf16> to vector<16x32xbf16>
    %cst_148 = arith.constant dense<0.000000e+00> : vector<16x32xf32>
    %269 = tpu.matmul %266, %268, %cst_148 {dimension_numbers = #tpu.dot_dimension_numbers<[1], [0], [0], [1], [0, 0, 1, 1], [], []>} : vector<16x16xbf16>, vector<16x32xbf16>, vector<16x32xf32> -> vector<16x32xf32>
    %270 = arith.addf %222, %269 : vector<16x32xf32>
    %c1_149 = arith.constant 1 : index
    %c0_150 = arith.constant 0 : index
    %c0_151 = arith.constant 0 : index
    %271 = vector.load %arg5[%c1_149, %c0_150, %c0_151] : memref<2x1x32xf32, #tpu.memory_space<vmem>>, vector<1x1x32xf32>
    %272 = vector.shape_cast %271 : vector<1x1x32xf32> to vector<1x32xf32>
    %273 = vector.broadcast %272 : vector<1x32xf32> to vector<16x32xf32>
    %274 = arith.addf %270, %273 : vector<16x32xf32>
    %275 = arith.addf %173, %274 : vector<16x32xf32>
    %c2_152 = arith.constant 2 : index
    %c0_153 = arith.constant 0 : index
    %c0_154 = arith.constant 0 : index
    %276 = vector.load %arg6[%c2_152, %c0_153, %c0_154] : memref<4x1x32xf32, #tpu.memory_space<vmem>>, vector<1x1x32xf32>
    %277 = vector.shape_cast %276 : vector<1x1x32xf32> to vector<1x32xf32>
    %c3_155 = arith.constant 3 : index
    %c0_156 = arith.constant 0 : index
    %c0_157 = arith.constant 0 : index
    %278 = vector.load %arg6[%c3_155, %c0_156, %c0_157] : memref<4x1x32xf32, #tpu.memory_space<vmem>>, vector<1x1x32xf32>
    %279 = vector.shape_cast %278 : vector<1x1x32xf32> to vector<1x32xf32>
    %cst_158 = arith.constant dense<0.000000e+00> : vector<16xf32>
    %280 = vector.multi_reduction <add>, %275, %cst_158 [1] : vector<16x32xf32> to vector<16xf32>
    %281 = vector.shape_cast %280 : vector<16xf32> to vector<16x1xf32>
    %cst_159 = arith.constant 3.200000e+01 : f32
    %282 = vector.broadcast %cst_159 : f32 to vector<16x1xf32>
    %283 = arith.divf %281, %282 : vector<16x1xf32>
    %284 = vector.broadcast %283 : vector<16x1xf32> to vector<16x32xf32>
    %285 = arith.subf %275, %284 : vector<16x32xf32>
    %286 = arith.mulf %285, %285 : vector<16x32xf32>
    %cst_160 = arith.constant dense<0.000000e+00> : vector<16xf32>
    %287 = vector.multi_reduction <add>, %286, %cst_160 [1] : vector<16x32xf32> to vector<16xf32>
    %288 = vector.shape_cast %287 : vector<16xf32> to vector<16x1xf32>
    %cst_161 = arith.constant 3.200000e+01 : f32
    %289 = vector.broadcast %cst_161 : f32 to vector<16x1xf32>
    %290 = arith.divf %288, %289 : vector<16x1xf32>
    %291 = vector.broadcast %283 : vector<16x1xf32> to vector<16x32xf32>
    %292 = arith.subf %275, %291 : vector<16x32xf32>
    %cst_162 = arith.constant 9.99999997E-7 : f32
    %293 = vector.broadcast %cst_162 : f32 to vector<16x1xf32>
    %294 = arith.addf %290, %293 : vector<16x1xf32>
    %295 = math.rsqrt %294 : vector<16x1xf32>
    %296 = vector.broadcast %295 : vector<16x1xf32> to vector<16x32xf32>
    %297 = arith.mulf %292, %296 : vector<16x32xf32>
    %298 = vector.broadcast %277 : vector<1x32xf32> to vector<16x32xf32>
    %299 = arith.mulf %297, %298 : vector<16x32xf32>
    %300 = vector.broadcast %279 : vector<1x32xf32> to vector<16x32xf32>
    %301 = arith.addf %299, %300 : vector<16x32xf32>
    %c1_163 = arith.constant 1 : index
    %c0_164 = arith.constant 0 : index
    %c0_165 = arith.constant 0 : index
    %302 = vector.load %arg7[%c1_163, %c0_164, %c0_165] : memref<2x32x64xbf16, #tpu.memory_space<vmem>>, vector<1x32x64xbf16>
    %303 = vector.shape_cast %302 : vector<1x32x64xbf16> to vector<32x64xbf16>
    %c1_166 = arith.constant 1 : index
    %c0_167 = arith.constant 0 : index
    %c0_168 = arith.constant 0 : index
    %304 = vector.load %arg8[%c1_166, %c0_167, %c0_168] : memref<2x1x64xf32, #tpu.memory_space<vmem>>, vector<1x1x64xf32>
    %305 = vector.shape_cast %304 : vector<1x1x64xf32> to vector<1x64xf32>
    %306 = arith.truncf %301 : vector<16x32xf32> to vector<16x32xbf16>
    %cst_169 = arith.constant dense<0.000000e+00> : vector<16x64xf32>
    %307 = tpu.matmul %306, %303, %cst_169 {dimension_numbers = #tpu.dot_dimension_numbers<[1], [0], [0], [1], [0, 0, 1, 1], [], []>} : vector<16x32xbf16>, vector<32x64xbf16>, vector<16x64xf32> -> vector<16x64xf32>
    %308 = vector.broadcast %305 : vector<1x64xf32> to vector<16x64xf32>
    %309 = arith.addf %307, %308 : vector<16x64xf32>
    %cst_170 = arith.constant 0.000000e+00 : f32
    %310 = vector.broadcast %cst_170 : f32 to vector<16x64xf32>
    %311 = arith.maximumf %309, %310 : vector<16x64xf32>
    %c1_171 = arith.constant 1 : index
    %c0_172 = arith.constant 0 : index
    %c0_173 = arith.constant 0 : index
    %312 = vector.load %arg9[%c1_171, %c0_172, %c0_173] : memref<2x64x32xbf16, #tpu.memory_space<vmem>>, vector<1x64x32xbf16>
    %313 = vector.shape_cast %312 : vector<1x64x32xbf16> to vector<64x32xbf16>
    %c1_174 = arith.constant 1 : index
    %c0_175 = arith.constant 0 : index
    %c0_176 = arith.constant 0 : index
    %314 = vector.load %arg10[%c1_174, %c0_175, %c0_176] : memref<2x1x32xf32, #tpu.memory_space<vmem>>, vector<1x1x32xf32>
    %315 = vector.shape_cast %314 : vector<1x1x32xf32> to vector<1x32xf32>
    %316 = arith.truncf %311 : vector<16x64xf32> to vector<16x64xbf16>
    %cst_177 = arith.constant dense<0.000000e+00> : vector<16x32xf32>
    %317 = tpu.matmul %316, %313, %cst_177 {dimension_numbers = #tpu.dot_dimension_numbers<[1], [0], [0], [1], [0, 0, 1, 1], [], []>} : vector<16x64xbf16>, vector<64x32xbf16>, vector<16x32xf32> -> vector<16x32xf32>
    %318 = vector.broadcast %315 : vector<1x32xf32> to vector<16x32xf32>
    %319 = arith.addf %317, %318 : vector<16x32xf32>
    %320 = arith.addf %301, %319 : vector<16x32xf32>
    %c2_178 = arith.constant 2 : index
    %c0_179 = arith.constant 0 : index
    %c0_180 = arith.constant 0 : index
    %321 = vector.load %arg11[%c2_178, %c0_179, %c0_180] : memref<4x1x32xf32, #tpu.memory_space<vmem>>, vector<1x1x32xf32>
    %322 = vector.shape_cast %321 : vector<1x1x32xf32> to vector<1x32xf32>
    %c3_181 = arith.constant 3 : index
    %c0_182 = arith.constant 0 : index
    %c0_183 = arith.constant 0 : index
    %323 = vector.load %arg11[%c3_181, %c0_182, %c0_183] : memref<4x1x32xf32, #tpu.memory_space<vmem>>, vector<1x1x32xf32>
    %324 = vector.shape_cast %323 : vector<1x1x32xf32> to vector<1x32xf32>
    %cst_184 = arith.constant dense<0.000000e+00> : vector<16xf32>
    %325 = vector.multi_reduction <add>, %320, %cst_184 [1] : vector<16x32xf32> to vector<16xf32>
    %326 = vector.shape_cast %325 : vector<16xf32> to vector<16x1xf32>
    %cst_185 = arith.constant 3.200000e+01 : f32
    %327 = vector.broadcast %cst_185 : f32 to vector<16x1xf32>
    %328 = arith.divf %326, %327 : vector<16x1xf32>
    %329 = vector.broadcast %328 : vector<16x1xf32> to vector<16x32xf32>
    %330 = arith.subf %320, %329 : vector<16x32xf32>
    %331 = arith.mulf %330, %330 : vector<16x32xf32>
    %cst_186 = arith.constant dense<0.000000e+00> : vector<16xf32>
    %332 = vector.multi_reduction <add>, %331, %cst_186 [1] : vector<16x32xf32> to vector<16xf32>
    %333 = vector.shape_cast %332 : vector<16xf32> to vector<16x1xf32>
    %cst_187 = arith.constant 3.200000e+01 : f32
    %334 = vector.broadcast %cst_187 : f32 to vector<16x1xf32>
    %335 = arith.divf %333, %334 : vector<16x1xf32>
    %336 = vector.broadcast %328 : vector<16x1xf32> to vector<16x32xf32>
    %337 = arith.subf %320, %336 : vector<16x32xf32>
    %cst_188 = arith.constant 9.99999997E-7 : f32
    %338 = vector.broadcast %cst_188 : f32 to vector<16x1xf32>
    %339 = arith.addf %335, %338 : vector<16x1xf32>
    %340 = math.rsqrt %339 : vector<16x1xf32>
    %341 = vector.broadcast %340 : vector<16x1xf32> to vector<16x32xf32>
    %342 = arith.mulf %337, %341 : vector<16x32xf32>
    %343 = vector.broadcast %322 : vector<1x32xf32> to vector<16x32xf32>
    %344 = arith.mulf %342, %343 : vector<16x32xf32>
    %345 = vector.broadcast %324 : vector<1x32xf32> to vector<16x32xf32>
    %346 = arith.addf %344, %345 : vector<16x32xf32>
    %c0_189 = arith.constant 0 : index
    %c0_190 = arith.constant 0 : index
    %347 = vector.load %arg12[%c0_189, %c0_190] : memref<32x256xbf16, #tpu.memory_space<vmem>>, vector<32x256xbf16>
    %c0_191 = arith.constant 0 : index
    %c0_192 = arith.constant 0 : index
    %348 = vector.load %arg13[%c0_191, %c0_192] : memref<1x256xf32, #tpu.memory_space<vmem>>, vector<1x256xf32>
    %349 = arith.truncf %346 : vector<16x32xf32> to vector<16x32xbf16>
    %cst_193 = arith.constant dense<0.000000e+00> : vector<16x256xf32>
    %350 = tpu.matmul %349, %347, %cst_193 {dimension_numbers = #tpu.dot_dimension_numbers<[1], [0], [0], [1], [0, 0, 1, 1], [], []>} : vector<16x32xbf16>, vector<32x256xbf16>, vector<16x256xf32> -> vector<16x256xf32>
    %351 = vector.broadcast %348 : vector<1x256xf32> to vector<16x256xf32>
    %352 = arith.addf %350, %351 : vector<16x256xf32>
    %cst_194 = arith.constant 0.000000e+00 : f32
    %353 = vector.broadcast %cst_194 : f32 to vector<16x256xf32>
    %354 = arith.maximumf %352, %353 : vector<16x256xf32>
    %c0_195 = arith.constant 0 : index
    %c0_196 = arith.constant 0 : index
    %355 = vector.load %arg14[%c0_195, %c0_196] : memref<256x16xbf16, #tpu.memory_space<vmem>>, vector<256x16xbf16>
    %c0_197 = arith.constant 0 : index
    %c0_198 = arith.constant 0 : index
    %356 = vector.load %arg15[%c0_197, %c0_198] : memref<1x16xf32, #tpu.memory_space<vmem>>, vector<1x16xf32>
    %357 = arith.truncf %354 : vector<16x256xf32> to vector<16x256xbf16>
    %cst_199 = arith.constant dense<0.000000e+00> : vector<16x16xf32>
    %358 = tpu.matmul %357, %355, %cst_199 {dimension_numbers = #tpu.dot_dimension_numbers<[1], [0], [0], [1], [0, 0, 1, 1], [], []>} : vector<16x256xbf16>, vector<256x16xbf16>, vector<16x16xf32> -> vector<16x16xf32>
    %359 = vector.broadcast %356 : vector<1x16xf32> to vector<16x16xf32>
    %360 = arith.addf %358, %359 : vector<16x16xf32>
    %c0_200 = arith.constant 0 : index
    %c0_201 = arith.constant 0 : index
    %361 = vector.load %arg1[%c0_200, %c0_201] : memref<16x16xf32, #tpu.memory_space<vmem>>, vector<16x16xf32>
    %362 = arith.addf %360, %361 : vector<16x16xf32>
    %c0_202 = arith.constant 0 : index
    %c0_203 = arith.constant 0 : index
    %363 = vector.load %arg16[%c0_202, %c0_203] : memref<16x32xbf16, #tpu.memory_space<vmem>>, vector<16x32xbf16>
    %c0_204 = arith.constant 0 : index
    %c0_205 = arith.constant 0 : index
    %364 = vector.load %arg17[%c0_204, %c0_205] : memref<1x32xf32, #tpu.memory_space<vmem>>, vector<1x32xf32>
    %365 = arith.truncf %362 : vector<16x16xf32> to vector<16x16xbf16>
    %cst_206 = arith.constant dense<0.000000e+00> : vector<16x32xf32>
    %366 = tpu.matmul %365, %363, %cst_206 {dimension_numbers = #tpu.dot_dimension_numbers<[1], [0], [0], [1], [0, 0, 1, 1], [], []>} : vector<16x16xbf16>, vector<16x32xbf16>, vector<16x32xf32> -> vector<16x32xf32>
    %367 = vector.broadcast %364 : vector<1x32xf32> to vector<16x32xf32>
    %368 = arith.addf %366, %367 : vector<16x32xf32>
    %cst_207 = arith.constant 0.000000e+00 : f32
    %369 = vector.broadcast %cst_207 : f32 to vector<16x32xf32>
    %370 = arith.maximumf %368, %369 : vector<16x32xf32>
    %c0_208 = arith.constant 0 : index
    %c0_209 = arith.constant 0 : index
    %371 = vector.load %arg18[%c0_208, %c0_209] : memref<32x32xbf16, #tpu.memory_space<vmem>>, vector<32x32xbf16>
    %c0_210 = arith.constant 0 : index
    %c0_211 = arith.constant 0 : index
    %372 = vector.load %arg19[%c0_210, %c0_211] : memref<1x32xf32, #tpu.memory_space<vmem>>, vector<1x32xf32>
    %373 = arith.truncf %370 : vector<16x32xf32> to vector<16x32xbf16>
    %cst_212 = arith.constant dense<0.000000e+00> : vector<16x32xf32>
    %374 = tpu.matmul %373, %371, %cst_212 {dimension_numbers = #tpu.dot_dimension_numbers<[1], [0], [0], [1], [0, 0, 1, 1], [], []>} : vector<16x32xbf16>, vector<32x32xbf16>, vector<16x32xf32> -> vector<16x32xf32>
    %375 = vector.broadcast %372 : vector<1x32xf32> to vector<16x32xf32>
    %376 = arith.addf %374, %375 : vector<16x32xf32>
    %c0_213 = arith.constant 0 : index
    %c0_214 = arith.constant 0 : index
    %377 = vector.load %arg21[%c0_213, %c0_214] : memref<16x16xf32, #tpu.memory_space<vmem>>, vector<16x16xf32>
    tpu.vector_store %arg21[%c0_213, %c0_214], %360 {strides = array<i32>} : memref<16x16xf32, #tpu.memory_space<vmem>>, vector<16x16xf32>,
    %c0_215 = arith.constant 0 : index
    %c0_216 = arith.constant 0 : index
    %378 = vector.load %arg22[%c0_215, %c0_216] : memref<16x16xf32, #tpu.memory_space<vmem>>, vector<16x16xf32>
    tpu.vector_store %arg22[%c0_215, %c0_216], %362 {strides = array<i32>} : memref<16x16xf32, #tpu.memory_space<vmem>>, vector<16x16xf32>,
    %379 = arith.addf %370, %376 : vector<16x32xf32>
    %c0_217 = arith.constant 0 : index
    %c0_218 = arith.constant 0 : index
    %c0_219 = arith.constant 0 : index
    %380 = vector.load %arg20[%c0_217, %c0_218, %c0_219] : memref<2x1x32xf32, #tpu.memory_space<vmem>>, vector<1x1x32xf32>
    %381 = vector.shape_cast %380 : vector<1x1x32xf32> to vector<1x32xf32>
    %c1_220 = arith.constant 1 : index
    %c0_221 = arith.constant 0 : index
    %c0_222 = arith.constant 0 : index
    %382 = vector.load %arg20[%c1_220, %c0_221, %c0_222] : memref<2x1x32xf32, #tpu.memory_space<vmem>>, vector<1x1x32xf32>
    %383 = vector.shape_cast %382 : vector<1x1x32xf32> to vector<1x32xf32>
    %cst_223 = arith.constant dense<0.000000e+00> : vector<16xf32>
    %384 = vector.multi_reduction <add>, %379, %cst_223 [1] : vector<16x32xf32> to vector<16xf32>
    %385 = vector.shape_cast %384 : vector<16xf32> to vector<16x1xf32>
    %cst_224 = arith.constant 3.200000e+01 : f32
    %386 = vector.broadcast %cst_224 : f32 to vector<16x1xf32>
    %387 = arith.divf %385, %386 : vector<16x1xf32>
    %388 = vector.broadcast %387 : vector<16x1xf32> to vector<16x32xf32>
    %389 = arith.subf %379, %388 : vector<16x32xf32>
    %390 = arith.mulf %389, %389 : vector<16x32xf32>
    %cst_225 = arith.constant dense<0.000000e+00> : vector<16xf32>
    %391 = vector.multi_reduction <add>, %390, %cst_225 [1] : vector<16x32xf32> to vector<16xf32>
    %392 = vector.shape_cast %391 : vector<16xf32> to vector<16x1xf32>
    %cst_226 = arith.constant 3.200000e+01 : f32
    %393 = vector.broadcast %cst_226 : f32 to vector<16x1xf32>
    %394 = arith.divf %392, %393 : vector<16x1xf32>
    %395 = vector.broadcast %387 : vector<16x1xf32> to vector<16x32xf32>
    %396 = arith.subf %379, %395 : vector<16x32xf32>
    %cst_227 = arith.constant 9.99999997E-7 : f32
    %397 = vector.broadcast %cst_227 : f32 to vector<16x1xf32>
    %398 = arith.addf %394, %397 : vector<16x1xf32>
    %399 = math.rsqrt %398 : vector<16x1xf32>
    %400 = vector.broadcast %399 : vector<16x1xf32> to vector<16x32xf32>
    %401 = arith.mulf %396, %400 : vector<16x32xf32>
    %402 = vector.broadcast %381 : vector<1x32xf32> to vector<16x32xf32>
    %403 = arith.mulf %401, %402 : vector<16x32xf32>
    %404 = vector.broadcast %383 : vector<1x32xf32> to vector<16x32xf32>
    %405 = arith.addf %403, %404 : vector<16x32xf32>
    %c0_228 = arith.constant 0 : index
    %c0_229 = arith.constant 0 : index
    %406 = vector.load %arg23[%c0_228, %c0_229] : memref<16x32xf32, #tpu.memory_space<vmem>>, vector<16x32xf32>
    tpu.vector_store %arg23[%c0_228, %c0_229], %405 {strides = array<i32>} : memref<16x32xf32, #tpu.memory_space<vmem>>, vector<16x32xf32>,
    return
  }
}

</mosaic_0001>

<bundles_post_ra>
// kernel: tpu_custom_call.1
= control target key start
LH: loop header
LB: loop body
LE: loop exit
PB: predicated region body
PF: predicated region fallthrough
CT: control target
= control target key end

     0   :  { %s4498_s0 = inlined_call_operand.vmem [shape: f32[16,32], index: 0, kind: input, shape index: {}]   ;;  %s4499_s1 = inlined_call_operand.vmem [shape: f32[16,16], index: 1, kind: input, shape index: {}]   ;;  %s4500_s2 = inlined_call_operand.vmem [shape: bf16[12,32,16], index: 2, kind: input, shape index: {}]   ;;  %s4501_s3 = inlined_call_operand.vmem [shape: f32[12,1,16], index: 3, kind: input, shape index: {}]   ;;  %s4502_s4 = inlined_call_operand.vmem [shape: bf16[4,16,32], index: 4, kind: input, shape index: {}]   ;;  %s4503_s5 = inlined_call_operand.vmem [shape: f32[2,1,32], index: 5, kind: input, shape index: {}]   ;;  %s4504_s6 = inlined_call_operand.vmem [shape: f32[4,1,32], index: 6, kind: input, shape index: {}]   ;;  %s4505_s7 = inlined_call_operand.vmem [shape: bf16[2,32,64], index: 7, kind: input, shape index: {}]   ;;  %s4506_s8 = inlined_call_operand.vmem [shape: f32[2,1,64], index: 8, kind: input, shape index: {}]   ;;  %s4507_s9 = inlined_call_operand.vmem [shape: bf16[2,64,32], index: 9, kind: input, shape index: {}]   ;;  %s4508_s10 = inlined_call_operand.vmem [shape: f32[2,1,32], index: 10, kind: input, shape index: {}]   ;;  %s4509_s11 = inlined_call_operand.vmem [shape: f32[4,1,32], index: 11, kind: input, shape index: {}]   ;;  %s4510_s12 = inlined_call_operand.vmem [shape: bf16[32,256], index: 12, kind: input, shape index: {}]   ;;  %s4511_s13 = inlined_call_operand.vmem [shape: f32[1,256], index: 13, kind: input, shape index: {}]   ;;  %s4512_s14 = inlined_call_operand.vmem [shape: bf16[256,16], index: 14, kind: input, shape index: {}]   ;;  %s4513_s15 = inlined_call_operand.vmem [shape: f32[1,16], index: 15, kind: input, shape index: {}]   ;;  %s4514_s16 = inlined_call_operand.vmem [shape: bf16[16,32], index: 16, kind: input, shape index: {}]   ;;  %s4515_s17 = inlined_call_operand.vmem [shape: f32[1,32], index: 17, kind: input, shape index: {}]   ;;  %s4516_s18 = inlined_call_operand.vmem [shape: bf16[32,32], index: 18, kind: input, shape index: {}]   ;;  %s4517_s19 = inlined_call_operand.vmem [shape: f32[1,32], index: 19, kind: input, shape index: {}]   ;;  %s4518_s20 = inlined_call_operand.vmem [shape: f32[2,1,32], index: 20, kind: input, shape index: {}]   ;;  %s4519_s21 = inlined_call_operand.hbm [shape: f32[16,16], index: 21, kind: output, shape index: {0}]   ;;  %s4520_s22 = inlined_call_operand.hbm [shape: f32[16,16], index: 22, kind: output, shape index: {1}]   ;;  %s4521_s23 = inlined_call_operand.hbm [shape: f32[16,32], index: 23, kind: output, shape index: {2}]  }
   0x1   :  { %4530 = sst [smem:[#allocation9_spill]] %s4498_s0 }
   0x2   :  { %4531 = sst [smem:[#allocation10_spill]] %s4499_s1 }
   0x3   :  { %4532 = sst [smem:[#allocation11_spill]] %s4500_s2 }
   0x4   :  { %4533 = sst [smem:[#allocation12_spill]] %s4501_s3 }
   0x5   :  { %4534 = sst [smem:[#allocation13_spill]] %s4502_s4 }
   0x6   :  { %4535 = sst [smem:[#allocation14_spill]] %s4503_s5 }
   0x7   :  { %4536 = sst [smem:[#allocation15_spill]] %s4504_s6 }
   0x8   :  { %4537 = sst [smem:[#allocation16_spill]] %s4505_s7 }
   0x9   :  { %29 = vsyncpa [#allocation3], 0  ;;  %s4538_s24 = sld [smem:[#allocation11_spill]]  ;;  %v3773_v1 = vmov 0.0   ;;  %vm3774_vm0 = vmmov 0   ;;  %vm100_vm1 = vcmask 261120  }
   0xa   :  { %3322 = vmatprep.subr.bf16.mxu1 %v3773_v1  ;;  %3314 = vmatprep.subr.bf16.mxu0 %v3773_v1  ;;  %s4539_s28 = sld [smem:[#allocation9_spill]] }
   0xb   :  { %3326 = vmatprep.mubr.msk.bf16.mxu1 %vm3774_vm0, %v3773_v1  ;;  %3318 = vmatprep.mubr.msk.bf16.mxu0 %vm3774_vm0, %v3773_v1 }
   0xf   :  { %v3592_v0 = vld [vmem:[%s4538_s24 + $0x28] sm:$0xff]   ;;  %v3594_v3 = vld [vmem:[%s4538_s24 + $0x20] sm:$0xff]  }
  0x10   :  { %v3593_v2 = vld [vmem:[%s4538_s24 + $0x8] sm:$0xff]   ;;  %3323 = vmatpush3.bf16.msra.mxu1 %v3592_v0  ;;  %v3595_v4 = vld [vmem:[%s4538_s24] sm:$0xff]  }
  0x11   :  { %3315 = vmatpush3.bf16.msra.mxu0 %v3593_v2  ;;  %3324 = vmatprep.subr.bf16.mxu1 %v3773_v1  ;;  %v3922_v5 = vld [vmem:[%s4539_s28] sm:$0xff]  ;;  %v3927_v6 = vld [vmem:[%s4539_s28 + $0x8] sm:$0xff] }
  0x12   :  { %3316 = vmatprep.subr.bf16.mxu0 %v3773_v1  ;;  %v3933_v7 = vpack.c.bf16 %v3927_v6, %v3922_v5  ;;  %v3596_v8 = vld [vmem:[%s4538_s24 + $0x48] sm:$0xff]  }
  0x14   :  { %3325 = vmatpush3.bf16.msra.mxu1 %v3594_v3 }
  0x15   :  { %3317 = vmatpush3.bf16.msra.mxu0 %v3595_v4  ;;  %3338 = vmatprep.subr.bf16.mxu1 %v3773_v1 }
  0x16   :  { %3330 = vmatprep.subr.bf16.mxu0 %v3773_v1 }
  0x17   :  { %3327 = vmatmul.mubr.msk.bf16.vlgmr.msra.gmra.mxu1 %vm100_vm1, %v3933_v7 }
  0x18   :  { %3319 = vmatmul.mubr.msk.bf16.vlgmr.msra.gmra.mxu0 %vm100_vm1, %v3933_v7  ;;  %3340 = vmatprep.mubr.msk.bf16.mxu1 %vm3774_vm0, %v3773_v1 }
  0x19   :  { %3331 = vmatpush3.bf16.msra.mxu0 %v3596_v8  ;;  %3334 = vmatprep.mubr.msk.bf16.mxu0 %vm3774_vm0, %v3773_v1 }
  0x1a   :  { %3332 = vmatprep.subr.bf16.mxu0 %v3773_v1 }
  0x1b   :  { %30 = vsyncpa [#allocation5], 0  ;;  %v3597_v9 = vld [vmem:[%s4538_s24 + $0x40] sm:$0xff]   ;;  %s4540_s26 = sld [smem:[#allocation12_spill]]  ;;  %vm281_vm2 = vcmask 130048   ;;  %vm406_vm3 = vcmask 1043456  }
  0x1c   :  { %vm376_vm4 = vcmask 64512   ;;  %v3598_v4 = vld [vmem:[%s4538_s24 + $0x38] sm:$0xff]   ;;  %s4541_s5 = sld [smem:[#allocation13_spill]]  ;;  %vm1184_vm5 = vcmask 523264  }
  0x1d   :  { %3333 = vmatpush3.bf16.msra.mxu0 %v3597_v9  ;;  %s4542_s7 = sld [smem:[#allocation14_spill]] }
  0x1e   :  { %3344 = vmatprep.subr.bf16.mxu0 %v3773_v1  ;;  %s4543_s3 = sld [smem:[#allocation16_spill]] }
  0x1f   :  { %s4544_s6 = sld [smem:[#allocation15_spill]] }
  0x20   :  { %3335 = vmatmul.mubr.msk.bf16.vlgmr.msra.gmra.mxu0 %vm100_vm1, %v3933_v7 }
  0x21   :  { %3346 = vmatprep.mubr.msk.bf16.mxu0 %vm3774_vm0, %v3773_v1  ;;  %v2988_v10 = vld [vmem:[%s4540_s26 + $0x2] ss:$0 sm:$0xff]  ;;  %v2979_v14 = vld [vmem:[%s4540_s26] ss:$0 sm:$0xff]  ;;  %v2997_v30 = vld [vmem:[%s4540_s26 + $0x4] ss:$0 sm:$0xff] }
  0xd7   :  { %v204_v11 = vpop.f32.mrf.mxu1 }
  0xd8   :  { %v205_v12 = vadd.f32 %v2988_v10, %v204_v11  ;;  %v138_v13 = vpop.f32.mrf.mxu0  ;;  %v3599_v11 = vld [vmem:[%s4538_s24 + $0x18] sm:$0xff]  }
  0xd9   :  { %v3328_v15 = vpop.f32.mrf.mxu1  ;;  %v139_v20 = vadd.f32 %v2979_v14, %v138_v13 }
  0xda   :  { %v279_v16 = vpack.c.bf16 %v205_v12, %v205_v12  ;;  %v3320_v17 = vpop.f32.mrf.mxu0  ;;  %v3600_v12 = vld [vmem:[%s4538_s24 + $0x30] sm:$0xff]   ;;  %v3602_v15 = vld [vmem:[%s4538_s24 + $0x58] sm:$0xff]  }
  0xdb   :  { %v207_v18 = vpop.f32.mrf.mxu1  ;;  %v277_v26 = vpack.c.bf16 %v139_v20, %v139_v20 }
  0xdc   :  { %v286_v19 = vsel %vm281_vm2, %v279_v16, 0  ;;  %v208_v21 = vadd.f32 %v2988_v10, %v207_v18  ;;  %v141_v22 = vpop.f32.mrf.mxu0  ;;  %v3603_v16 = vld [vmem:[%s4538_s24 + $0x50] sm:$0xff]  }
  0xdd   :  { %v3329_v23 = vpop.f32.mrf.mxu1  ;;  %3339 = vmatpush3.bf16.xpose.msra.mxu1 %v286_v19  ;;  %v142_v28 = vadd.f32 %v2979_v14, %v141_v22  ;;  %v3601_v14 = vld [vmem:[%s4538_s24 + $0x10] sm:$0xff]  }
  0xde   :  { %v280_v24 = vpack.c.bf16 %v208_v21, %v208_v21  ;;  %v3321_v25 = vpop.f32.mrf.mxu0  ;;  %3350 = vmatprep.subr.bf16.mxu1 %v3773_v1 }
  0xdf   :  { %v278_v29 = vpack.c.bf16 %v142_v28, %v142_v28 }
  0xe0   :  { %v332_v27 = vsel %vm281_vm2, %v280_v24, 0  ;;  %v270_v31 = vpop.f32.mrf.mxu0  ;;  %v3019_v24 = vld [vmem:[%s4540_s26 + $0x3] ss:$0 sm:$0xff] }
  0xe1   :  { %3345 = vmatpush3.bf16.xpose.msra.mxu0 %v332_v27  ;;  %v271_v32 = vadd.f32 %v2997_v30, %v270_v31 }
  0xe2   :  { %3356 = vmatprep.subr.bf16.mxu0 %v3773_v1  ;;  %v3336_v33 = vpop.f32.mrf.mxu0 }
  0xe3   :  { %v401_v34 = vpack.c.bf16 %v271_v32, %v271_v32 }
  0xe4   :  { %3341 = vmatmul.mubr.msk.bf16.vlgmr.msra.gmra.mxu1 %vm281_vm2, %v277_v26  ;;  %v273_v35 = vpop.f32.mrf.mxu0 }
  0xe5   :  { %3352 = vmatprep.mubr.msk.bf16.mxu1 %vm3774_vm0, %v3773_v1  ;;  %v408_v36 = vsel %vm406_vm3, %v401_v34, 0  ;;  %v274_v37 = vadd.f32 %v2997_v30, %v273_v35 }
  0xe6   :  { %v3337_v38 = vpop.f32.mrf.mxu0  ;;  %3351 = vmatpush3.bf16.msra.mxu1 %v408_v36 }
  0xe7   :  { %v402_v39 = vpack.c.bf16 %v274_v37, %v274_v37  ;;  %3362 = vmatprep.subr.bf16.mxu1 %v3773_v1 }
  0xe8   :  { %3347 = vmatmul.mubr.msk.bf16.vlgmr.msra.gmra.mxu0 %vm281_vm2, %v278_v29  ;;  %v3010_v29 = vld [vmem:[%s4540_s26 + $0x1] ss:$0 sm:$0xff] }
  0xe9   :  { %3358 = vmatprep.mubr.msk.bf16.mxu0 %vm3774_vm0, %v3773_v1  ;;  %v454_v40 = vsel %vm406_vm3, %v402_v39, 0 }
  0xea   :  { %3357 = vmatpush3.bf16.msra.mxu0 %v454_v40 }
  0xeb   :  { %3370 = vmatprep.subr.bf16.mxu0 %v3773_v1 }
 0x1a4   :  { %v322_v41 = vpop.f32.mrf.mxu1 }
 0x1a5   :  { %v374_v48 = vmul.f32 0.25, %v322_v41 }
 0x1a6   :  { %v3342_v42 = vpop.f32.mrf.mxu1 }
 0x1a7   :  { %v377_v52 = vsel %vm376_vm4, %v374_v48, -inf }
 0x1a8   :  { %v325_v43 = vpop.f32.mrf.mxu1  ;;  %v368_v44 = vpop.f32.mrf.mxu0 }
 0x1a9   :  { %v375_v45 = vmul.f32 0.25, %v368_v44 }
 0x1aa   :  { %v3343_v46 = vpop.f32.mrf.mxu1  ;;  %v3348_v47 = vpop.f32.mrf.mxu0 }
 0x1ab   :  { %v380_v49 = vsel %vm376_vm4, %v375_v45, -inf }
 0x1ac   :  { %381 = vmax.xlane.f32.xlu0 %v380_v49  ;;  %v371_v50 = vpop.f32.mrf.mxu0 }
 0x1ae   :  { %v3349_v51 = vpop.f32.mrf.mxu0 }
 0x1b0   :  { %378 = vmax.xlane.f32.xlu0 %v377_v52 }
 0x235   :  { %v382_v53 = vpop.xlane.xlu0 %381 }
 0x236   :  { %v384_v54 = vsub.f32 %v375_v45, %v382_v53  ;;  %v3028_v45 = vld [vmem:[%s4540_s26 + $0x5] ss:$0 sm:$0xff] }
 0x238   :  { %v387_v55 = vmul.f32 1.442695, %v384_v54 }
 0x239   :  { %v379_v56 = vpop.xlane.xlu0 %378 }
 0x23a   :  { %3657 = vpow2.f32 %v387_v55  ;;  %v383_v57 = vsub.f32 %v374_v48, %v379_v56 }
 0x23c   :  { %v385_v58 = vmul.f32 1.442695, %v383_v57 }
 0x23e   :  { %3659 = vpow2.f32 %v385_v58 }
 0x247   :  { %v3658_v59 = vpop.eup %3657 }
 0x248   :  { %v392_v60 = vsel %vm376_vm4, %v3658_v59, 0.0 }
 0x249   :  { %393 = vadd.xlane.f32.xlu1 %v392_v60 }
 0x24b   :  { %v3660_v61 = vpop.eup %3659 }
 0x24c   :  { %v389_v62 = vsel %vm376_vm4, %v3660_v61, 0.0 }
 0x24d   :  { %390 = vadd.xlane.f32.xlu1 %v389_v62 }
 0x2d2   :  { %v394_v63 = vpop.xlane.xlu1 %393 }
 0x2d3   :  { %3661 = vrcp.f32 %v394_v63 }
 0x2d6   :  { %v391_v0 = vpop.xlane.xlu1 %390 }
 0x2d7   :  { %3663 = vrcp.f32 %v391_v0 }
 0x2e0   :  { %v3662_v2 = vpop.eup %3661 }
 0x2e1   :  { %v398_v3 = vmul.f32 %v3662_v2, %v3658_v59 }
 0x2e3   :  { %v400_v8 = vpack.c.bf16 %v398_v3, %v398_v3 }
 0x2e4   :  { %v3664_v9 = vpop.eup %3663 }
 0x2e5   :  { %3359 = vmatmul.mubr.msk.bf16.vlgmr.msra.gmra.mxu0 %vm376_vm4, %v400_v8  ;;  %v397_v10 = vmul.f32 %v3664_v9, %v3660_v61 }
 0x2e6   :  { %3371 = vmatpush3.bf16.msra.mxu0 %v3598_v4  ;;  %3374 = vmatprep.mubr.msk.bf16.mxu0 %vm3774_vm0, %v3773_v1 }
 0x2e7   :  { %v399_v13 = vpack.c.bf16 %v397_v10, %v397_v10  ;;  %3372 = vmatprep.subr.bf16.mxu0 %v3773_v1 }
 0x2e9   :  { %3353 = vmatmul.mubr.msk.bf16.vlgmr.msra.gmra.mxu1 %vm376_vm4, %v399_v13 }
 0x2ea   :  { %3363 = vmatpush3.bf16.msra.mxu1 %v3599_v11  ;;  %3373 = vmatpush3.bf16.msra.mxu0 %v3600_v12 }
 0x2eb   :  { %3364 = vmatprep.subr.bf16.mxu1 %v3773_v1  ;;  %3366 = vmatprep.mubr.msk.bf16.mxu1 %vm3774_vm0, %v3773_v1 }
 0x2ec   :  { %3386 = vmatprep.subr.bf16.mxu0 %v3773_v1 }
 0x2ed   :  { %3375 = vmatmul.mubr.msk.bf16.vlgmr.msra.gmra.mxu0 %vm100_vm1, %v3933_v7 }
 0x2ee   :  { %3365 = vmatpush3.bf16.msra.mxu1 %v3601_v14  ;;  %3388 = vmatprep.mubr.msk.bf16.mxu0 %vm3774_vm0, %v3773_v1 }
 0x2ef   :  { %3378 = vmatprep.subr.bf16.mxu1 %v3773_v1 }
 0x2f1   :  { %3367 = vmatmul.mubr.msk.bf16.vlgmr.msra.gmra.mxu1 %vm100_vm1, %v3933_v7 }
 0x2f2   :  { %3382 = vmatprep.mubr.msk.bf16.mxu1 %vm3774_vm0, %v3773_v1  ;;  %3379 = vmatpush3.bf16.msra.mxu1 %v3602_v15 }
 0x2f3   :  { %3380 = vmatprep.subr.bf16.mxu1 %v3773_v1 }
 0x2f6   :  { %3381 = vmatpush3.bf16.msra.mxu1 %v3603_v16 }
 0x2f7   :  { %3392 = vmatprep.subr.bf16.mxu1 %v3773_v1 }
 0x2f9   :  { %3383 = vmatmul.mubr.msk.bf16.vlgmr.msra.gmra.mxu1 %vm100_vm1, %v3933_v7 }
 0x2fa   :  { %3394 = vmatprep.mubr.msk.bf16.mxu1 %vm3774_vm0, %v3773_v1 }
 0x3a5   :  { %v4026_v17 = vpop.f32.mrf.mxu0 }
 0x3a7   :  { %v3360_v18 = vpop.f32.mrf.mxu0 }
 0x3a9   :  { %v4028_v19 = vpop.f32.mrf.mxu1  ;;  %v493_v20 = vpop.f32.mrf.mxu0 }
 0x3aa   :  { %v496_v21 = vpack.c.bf16 %v4026_v17, %v4028_v19 }
 0x3ab   :  { %v3354_v22 = vpop.f32.mrf.mxu1  ;;  %v3361_v23 = vpop.f32.mrf.mxu0 }
 0x3ad   :  { %v447_v25 = vpop.f32.mrf.mxu1  ;;  %v624_v7 = vpop.f32.mrf.mxu0 }
 0x3ae   :  { %v625_v26 = vadd.f32 %v3019_v24, %v624_v7 }
 0x3af   :  { %v3355_v27 = vpop.f32.mrf.mxu1  ;;  %v3376_v28 = vpop.f32.mrf.mxu0 }
 0x3b0   :  { %v699_v30 = vpack.c.bf16 %v625_v26, %v625_v26  ;;  %v3604_v27 = vld [vmem:[%s4541_s5] sm:$0xff]  }
 0x3b1   :  { %v558_v31 = vpop.f32.mrf.mxu1  ;;  %v627_v32 = vpop.f32.mrf.mxu0 }
 0x3b2   :  { %v705_v33 = vsel %vm281_vm2, %v699_v30, 0  ;;  %v559_v34 = vadd.f32 %v3010_v29, %v558_v31  ;;  %v628_v35 = vadd.f32 %v3019_v24, %v627_v32 }
 0x3b3   :  { %v3368_v36 = vpop.f32.mrf.mxu1  ;;  %v3377_v37 = vpop.f32.mrf.mxu0  ;;  %3387 = vmatpush3.bf16.xpose.msra.mxu0 %v705_v33 }
 0x3b4   :  { %v700_v38 = vpack.c.bf16 %v628_v35, %v628_v35  ;;  %3398 = vmatprep.subr.bf16.mxu0 %v3773_v1  ;;  %v697_v40 = vpack.c.bf16 %v559_v34, %v559_v34 }
 0x3b5   :  { %v561_v39 = vpop.f32.mrf.mxu1 }
 0x3b6   :  { %v751_v41 = vsel %vm281_vm2, %v700_v38, 0  ;;  %v562_v43 = vadd.f32 %v3010_v29, %v561_v39  ;;  %v3605_v29 = vld [vmem:[%s4541_s5 + $0x8] sm:$0xff]  }
 0x3b7   :  { %v3369_v42 = vpop.f32.mrf.mxu1  ;;  %3393 = vmatpush3.bf16.xpose.msra.mxu1 %v751_v41  ;;  %v3042_v41 = vld [vmem:[%s4542_s7] ss:$0 sm:$0xff] }
 0x3b8   :  { %3404 = vmatprep.subr.bf16.mxu1 %v3773_v1  ;;  %v698_v44 = vpack.c.bf16 %v562_v43, %v562_v43 }
 0x3b9   :  { %v690_v46 = vpop.f32.mrf.mxu1 }
 0x3ba   :  { %3389 = vmatmul.mubr.msk.bf16.vlgmr.msra.gmra.mxu0 %vm281_vm2, %v697_v40  ;;  %v691_v47 = vadd.f32 %v3028_v45, %v690_v46 }
 0x3bb   :  { %3400 = vmatprep.mubr.msk.bf16.mxu0 %vm3774_vm0, %v3773_v1  ;;  %v3384_v48 = vpop.f32.mrf.mxu1 }
 0x3bc   :  { %v819_v49 = vpack.c.bf16 %v691_v47, %v691_v47 }
 0x3bd   :  { %v693_v50 = vpop.f32.mrf.mxu1 }
 0x3be   :  { %3395 = vmatmul.mubr.msk.bf16.vlgmr.msra.gmra.mxu1 %vm281_vm2, %v698_v44  ;;  %v825_v51 = vsel %vm406_vm3, %v819_v49, 0  ;;  %v694_v52 = vadd.f32 %v3028_v45, %v693_v50 }
 0x3bf   :  { %3406 = vmatprep.mubr.msk.bf16.mxu1 %vm3774_vm0, %v3773_v1  ;;  %v3385_v53 = vpop.f32.mrf.mxu1  ;;  %3399 = vmatpush3.bf16.msra.mxu0 %v825_v51 }
 0x3c0   :  { %v820_v54 = vpack.c.bf16 %v694_v52, %v694_v52  ;;  %3410 = vmatprep.subr.bf16.mxu0 %v3773_v1 }
 0x3c2   :  { %v871_v55 = vsel %vm406_vm3, %v820_v54, 0 }
 0x3c3   :  { %3405 = vmatpush3.bf16.msra.mxu1 %v871_v55 }
 0x3c4   :  { %3416 = vmatprep.subr.bf16.mxu1 %v3773_v1 }
 0x47a   :  { %v741_v56 = vpop.f32.mrf.mxu0 }
 0x47b   :  { %v793_v57 = vmul.f32 0.25, %v741_v56 }
 0x47c   :  { %v3390_v58 = vpop.f32.mrf.mxu0 }
 0x47d   :  { %v795_v59 = vsel %vm376_vm4, %v793_v57, -inf }
 0x47e   :  { %v787_v60 = vpop.f32.mrf.mxu1  ;;  %796 = vmax.xlane.f32.xlu0 %v795_v59  ;;  %v744_v61 = vpop.f32.mrf.mxu0 }
 0x47f   :  { %v794_v62 = vmul.f32 0.25, %v787_v60 }
 0x480   :  { %v3391_v63 = vpop.f32.mrf.mxu0  ;;  %v3396_v0 = vpop.f32.mrf.mxu1 }
 0x481   :  { %v798_v2 = vsel %vm376_vm4, %v794_v62, -inf  ;;  %v3608_v63 = vld [vmem:[%s4507_s9 + $0x18] sm:$0xff]  }
 0x482   :  { %799 = vmax.xlane.f32.xlu1 %v798_v2  ;;  %v790_v3 = vpop.f32.mrf.mxu1 }
 0x484   :  { %v3397_v4 = vpop.f32.mrf.mxu1 }
 0x507   :  { %v797_v8 = vpop.xlane.xlu0 %796 }
 0x508   :  { %v801_v9 = vsub.f32 %v793_v57, %v797_v8 }
 0x50a   :  { %v803_v10 = vmul.f32 1.442695, %v801_v9 }
 0x50b   :  { %v800_v11 = vpop.xlane.xlu1 %799 }
 0x50c   :  { %3665 = vpow2.f32 %v803_v10  ;;  %v802_v12 = vsub.f32 %v794_v62, %v800_v11  ;;  %v3607_v62 = vld [vmem:[%s4543_s3] sm:$0xff]  }
 0x50e   :  { %v805_v13 = vmul.f32 1.442695, %v802_v12  ;;  %v3044_v12 = vld [vmem:[%s4544_s6] ss:$0 sm:$0xff] }
 0x510   :  { %3667 = vpow2.f32 %v805_v13 }
 0x519   :  { %v3666_v14 = vpop.eup %3665 }
 0x51a   :  { %v807_v15 = vsel %vm376_vm4, %v3666_v14, 0.0 }
 0x51b   :  { %808 = vadd.xlane.f32.xlu0 %v807_v15 }
 0x51d   :  { %v3668_v16 = vpop.eup %3667 }
 0x51e   :  { %v810_v18 = vsel %vm376_vm4, %v3668_v16, 0.0 }
 0x51f   :  { %811 = vadd.xlane.f32.xlu1 %v810_v18 }
 0x5a4   :  { %v809_v20 = vpop.xlane.xlu0 %808 }
 0x5a5   :  { %3669 = vrcp.f32 %v809_v20 }
 0x5a8   :  { %v812_v22 = vpop.xlane.xlu1 %811 }
 0x5a9   :  { %3671 = vrcp.f32 %v812_v22 }
 0x5b2   :  { %v3670_v23 = vpop.eup %3669 }
 0x5b3   :  { %v815_v24 = vmul.f32 %v3670_v23, %v3666_v14 }
 0x5b5   :  { %v817_v25 = vpack.c.bf16 %v815_v24, %v815_v24  ;;  %v3609_v24 = vld [vmem:[%s4507_s9 + $0x10] sm:$0xff]  }
 0x5b6   :  { %v3672_v7 = vpop.eup %3671 }
 0x5b7   :  { %3401 = vmatmul.mubr.msk.bf16.vlgmr.msra.gmra.mxu0 %vm376_vm4, %v817_v25  ;;  %v816_v26 = vmul.f32 %v3672_v7, %v3668_v16  ;;  %v3045_v16 = vld [vmem:[%s4544_s6 + $0x1] ss:$0 sm:$0xff]  ;;  %v3610_v25 = vld [vmem:[%s4507_s9 + $0x8] sm:$0xff]  }
 0x5b8   :  { %3412 = vmatprep.mubr.msk.bf16.mxu0 %vm3774_vm0, %v3773_v1  ;;  %3411 = vmatpush3.bf16.msra.mxu0 %v3605_v29  ;;  %v3611_v7 = vld [vmem:[%s4507_s9] sm:$0xff]  }
 0x5b9   :  { %v818_v28 = vpack.c.bf16 %v816_v26, %v816_v26  ;;  %3422 = vmatprep.subr.bf16.mxu0 %v3773_v1  ;;  %v3046_v26 = vld [vmem:[%s4506_s8] ss:$0 sm:$0xff] }
 0x5bb   :  { %3407 = vmatmul.mubr.msk.bf16.vlgmr.msra.gmra.mxu1 %vm376_vm4, %v818_v28 }
 0x5bc   :  { %3417 = vmatpush3.bf16.msra.mxu1 %v3604_v27  ;;  %3418 = vmatprep.mubr.msk.bf16.mxu1 %vm3774_vm0, %v3773_v1 }
 0x5bd   :  { %3430 = vmatprep.subr.bf16.mxu1 %v3773_v1 }
 0x5c3   :  { %3419 = vmatmul.mubr.msk.bf16.vlgmr.msra.gmra.mxu1 %vm281_vm2, %v496_v21 }
 0x5c4   :  { %3438 = vmatprep.mubr.msk.bf16.mxu1 %vm3774_vm0, %v3773_v1  ;;  %3431 = vmatpush3.bf16.msra.mxu1 %v3608_v63 }
 0x5c5   :  { %3432 = vmatprep.subr.bf16.mxu1 %v3773_v1 }
 0x5c8   :  { %3433 = vmatpush3.bf16.msra.mxu1 %v3609_v24 }
 0x5c9   :  { %3434 = vmatprep.subr.bf16.mxu1 %v3773_v1 }
 0x5cc   :  { %3435 = vmatpush3.bf16.msra.mxu1 %v3610_v25 }
 0x5cd   :  { %3436 = vmatprep.subr.bf16.mxu1 %v3773_v1 }
 0x5d0   :  { %3437 = vmatpush3.bf16.msra.mxu1 %v3611_v7  ;;  %v3073_v7 = vld [vmem:[%s4540_s26 + $0x8] ss:$0 sm:$0xff] }
 0x5d1   :  { %3458 = vmatprep.subr.bf16.mxu1 %v3773_v1 }
 0x677   :  { %v861_v30 = vpop.f32.mrf.mxu0 }
 0x679   :  { %v3402_v31 = vpop.f32.mrf.mxu0 }
 0x67b   :  { %v864_v32 = vpop.f32.mrf.mxu0  ;;  %v907_v33 = vpop.f32.mrf.mxu1 }
 0x67c   :  { %v913_v34 = vpack.c.bf16 %v907_v33, %v861_v30 }
 0x67d   :  { %v3403_v35 = vpop.f32.mrf.mxu0  ;;  %v3408_v36 = vpop.f32.mrf.mxu1 }
 0x67e   :  { %3413 = vmatmul.mubr.msk.bf16.vlgmr.msra.gmra.mxu0 %vm281_vm2, %v913_v34  ;;  %v3050_v36 = vld [vmem:[%s4508_s10] ss:$0 sm:$0xff] }
 0x67f   :  { %v910_v17 = vpop.f32.mrf.mxu1  ;;  %3426 = vmatprep.mubr.msk.bf16.mxu0 %vm3774_vm0, %v3773_v1 }
 0x681   :  { %v3409_v19 = vpop.f32.mrf.mxu1 }
 0x683   :  { %v1010_v21 = vpop.f32.mrf.mxu1 }
 0x685   :  { %v3420_v37 = vpop.f32.mrf.mxu1 }
 0x687   :  { %v1013_v38 = vpop.f32.mrf.mxu1 }
 0x689   :  { %v3421_v39 = vpop.f32.mrf.mxu1 }
 0x73e   :  { %v960_v40 = vpop.f32.mrf.mxu0 }
 0x73f   :  { %v1011_v42 = vadd.f32 %v1010_v21, %v960_v40 }
 0x740   :  { %v3414_v43 = vpop.f32.mrf.mxu0 }
 0x741   :  { %v1024_v44 = vadd.f32 %v3042_v41, %v1011_v42 }
 0x742   :  { %v963_v45 = vpop.f32.mrf.mxu0 }
 0x743   :  { %v1014_v46 = vadd.f32 %v1013_v38, %v963_v45  ;;  %v1026_v47 = vadd.f32 %v1024_v44, %v3922_v5 }
 0x744   :  { %v3415_v48 = vpop.f32.mrf.mxu0 }
 0x745   :  { %v1025_v49 = vadd.f32 %v3042_v41, %v1014_v46  ;;  %v1031_v50 = vsel %vm100_vm1, %v1026_v47, 0.0 }
 0x746   :  { %1032 = vadd.xlane.f32.xlu0 %v1031_v50 }
 0x747   :  { %v1027_v51 = vadd.f32 %v1025_v49, %v3927_v6  ;;  %v3606_v6 = vld [vmem:[%s4543_s3 + $0x8] sm:$0xff]  }
 0x748   :  { %3423 = vmatpush3.bf16.msra.mxu0 %v3606_v6 }
 0x749   :  { %v1034_v52 = vsel %vm100_vm1, %v1027_v51, 0.0  ;;  %3424 = vmatprep.subr.bf16.mxu0 %v3773_v1 }
 0x74a   :  { %1035 = vadd.xlane.f32.xlu1 %v1034_v52 }
 0x74c   :  { %3425 = vmatpush3.bf16.msra.mxu0 %v3607_v62 }
 0x74d   :  { %3442 = vmatprep.subr.bf16.mxu0 %v3773_v1 }
 0x7cf   :  { %v1033_v53 = vpop.xlane.xlu0 %1032 }
 0x7d0   :  { %v1038_v54 = vmul.f32 0.03125, %v1033_v53 }
 0x7d2   :  { %v1040_v55 = vsub.f32 %v1026_v47, %v1038_v54  ;;  %v3612_v54 = vld [vmem:[%s4538_s24 + $0x68] sm:$0xff]  }
 0x7d3   :  { %v1036_v56 = vpop.xlane.xlu1 %1035 }
 0x7d4   :  { %v1039_v57 = vmul.f32 0.03125, %v1036_v56  ;;  %v1042_v58 = vmul.f32 %v1040_v55, %v1040_v55  ;;  %v3614_v56 = vld [vmem:[%s4538_s24 + $0x60] sm:$0xff]  }
 0x7d6   :  { %v1041_v59 = vsub.f32 %v1027_v51, %v1039_v57  ;;  %v1044_v60 = vsel %vm100_vm1, %v1042_v58, 0.0  ;;  %v3615_v57 = vld [vmem:[%s4538_s24 + $0xa0] sm:$0xff]  }
 0x7d7   :  { %1045 = vadd.xlane.f32.xlu0 %v1044_v60 }
 0x7d8   :  { %v1043_v5 = vmul.f32 %v1041_v59, %v1041_v59 }
 0x7da   :  { %v1047_v61 = vsel %vm100_vm1, %v1043_v5, 0.0 }
 0x7db   :  { %1048 = vadd.xlane.f32.xlu1 %v1047_v61 }
 0x860   :  { %v1046_v0 = vpop.xlane.xlu0 %1045 }
 0x861   :  { %v1050_v2 = vmul.f32 0.03125, %v1046_v0  ;;  %v3057_v0 = vld [vmem:[%s4509_s11] ss:$0 sm:$0xff] }
 0x863   :  { %v1052_v3 = vadd.f32 1e-06, %v1050_v2 }
 0x864   :  { %v1049_v4 = vpop.xlane.xlu1 %1048 }
 0x865   :  { %3673 = vrsqrt.f32 %v1052_v3  ;;  %v1051_v8 = vmul.f32 0.03125, %v1049_v4 }
 0x867   :  { %v1053_v9 = vadd.f32 1e-06, %v1051_v8  ;;  %v3058_v8 = vld [vmem:[%s4509_s11 + $0x1] ss:$0 sm:$0xff] }
 0x869   :  { %3675 = vrsqrt.f32 %v1053_v9 }
 0x872   :  { %v3674_v10 = vpop.eup %3673 }
 0x873   :  { %v1056_v11 = vmul.f32 %v3674_v10, %v1040_v55  ;;  %v3613_v55 = vld [vmem:[%s4538_s24 + $0xa8] sm:$0xff]  }
 0x875   :  { %v1064_v15 = vmul.f32 %v3044_v12, %v1056_v11 }
 0x876   :  { %v3676_v13 = vpop.eup %3675 }
 0x877   :  { %v1057_v14 = vmul.f32 %v3676_v13, %v1041_v59  ;;  %v1072_v20 = vadd.f32 %v3045_v16, %v1064_v15 }
 0x879   :  { %v1065_v18 = vmul.f32 %v3044_v12, %v1057_v14  ;;  %v3616_v12 = vld [vmem:[%s4538_s24 + $0x88] sm:$0xff]   ;;  %v3617_v14 = vld [vmem:[%s4538_s24 + $0x80] sm:$0xff]  }
 0x87b   :  { %v1073_v22 = vadd.f32 %v3045_v16, %v1065_v18 }
 0x87d   :  { %v1079_v23 = vpack.c.bf16 %v1073_v22, %v1072_v20 }
 0x87f   :  { %3427 = vmatmul.mubr.msk.bf16.vlgmr.msra.gmra.mxu0 %vm100_vm1, %v1079_v23 }
 0x880   :  { %3446 = vmatprep.mubr.msk.bf16.mxu0 %vm3774_vm0, %v3773_v1  ;;  %3443 = vmatpush3.bf16.msra.mxu0 %v3612_v54 }
 0x881   :  { %3444 = vmatprep.subr.bf16.mxu0 %v3773_v1 }
 0x884   :  { %3445 = vmatpush3.bf16.msra.mxu0 %v3614_v56 }
 0x885   :  { %3450 = vmatprep.subr.bf16.mxu0 %v3773_v1 }
 0x93f   :  { %v1135_v27 = vpop.f32.mrf.mxu0 }
 0x940   :  { %v1136_v29 = vadd.f32 %v3046_v26, %v1135_v27 }
 0x941   :  { %v3428_v28 = vpop.f32.mrf.mxu0 }
 0x942   :  { %v1142_v33 = vmax.f32 %v1136_v29, 0.0  ;;  %v3082_v28 = vld [vmem:[%s4540_s26 + $0xa] ss:$0 sm:$0xff] }
 0x943   :  { %v1138_v30 = vpop.f32.mrf.mxu0 }
 0x944   :  { %v1139_v31 = vadd.f32 %v3046_v26, %v1138_v30 }
 0x945   :  { %v3429_v32 = vpop.f32.mrf.mxu0 }
 0x946   :  { %v1143_v34 = vmax.f32 %v1139_v31, 0.0  ;;  %v3064_v31 = vld [vmem:[%s4540_s26 + $0x6] ss:$0 sm:$0xff] }
 0x948   :  { %v1153_v35 = vpack.c.bf16 %v1143_v34, %v1142_v33 }
 0x94a   :  { %3439 = vmatmul.mubr.msk.bf16.vlgmr.msra.gmra.mxu1 %vm1184_vm5, %v1153_v35 }
 0x94b   :  { %3462 = vmatprep.mubr.msk.bf16.mxu1 %vm3774_vm0, %v3773_v1  ;;  %3459 = vmatpush3.bf16.msra.mxu1 %v3613_v55 }
 0x94c   :  { %3460 = vmatprep.subr.bf16.mxu1 %v3773_v1 }
 0x94f   :  { %3461 = vmatpush3.bf16.msra.mxu1 %v3615_v57 }
 0x950   :  { %3472 = vmatprep.subr.bf16.mxu1 %v3773_v1 }
 0xa0a   :  { %v1222_v17 = vpop.f32.mrf.mxu1 }
 0xa0b   :  { %v1223_v19 = vadd.f32 %v3050_v36, %v1222_v17 }
 0xa0c   :  { %v3440_v21 = vpop.f32.mrf.mxu1 }
 0xa0d   :  { %v1229_v37 = vadd.f32 %v1223_v19, %v1072_v20 }
 0xa0e   :  { %v1225_v38 = vpop.f32.mrf.mxu1 }
 0xa0f   :  { %v1226_v39 = vadd.f32 %v3050_v36, %v1225_v38  ;;  %v1234_v40 = vsel %vm100_vm1, %v1229_v37, 0.0 }
 0xa10   :  { %1235 = vadd.xlane.f32.xlu0 %v1234_v40  ;;  %v3441_v41 = vpop.f32.mrf.mxu1 }
 0xa11   :  { %v1230_v42 = vadd.f32 %v1226_v39, %v1073_v22 }
 0xa13   :  { %v1237_v43 = vsel %vm100_vm1, %v1230_v42, 0.0 }
 0xa14   :  { %1238 = vadd.xlane.f32.xlu1 %v1237_v43 }
 0xa99   :  { %v1236_v44 = vpop.xlane.xlu0 %1235 }
 0xa9a   :  { %v1240_v45 = vmul.f32 0.03125, %v1236_v44 }
 0xa9c   :  { %v1242_v46 = vsub.f32 %v1229_v37, %v1240_v45 }
 0xa9d   :  { %v1239_v47 = vpop.xlane.xlu1 %1238 }
 0xa9e   :  { %v1241_v48 = vmul.f32 0.03125, %v1239_v47  ;;  %v1244_v49 = vmul.f32 %v1242_v46, %v1242_v46 }
 0xaa0   :  { %v1243_v50 = vsub.f32 %v1230_v42, %v1241_v48  ;;  %v1246_v51 = vsel %vm100_vm1, %v1244_v49, 0.0 }
 0xaa1   :  { %1247 = vadd.xlane.f32.xlu0 %v1246_v51 }
 0xaa2   :  { %v1245_v52 = vmul.f32 %v1243_v50, %v1243_v50 }
 0xaa4   :  { %v1249_v53 = vsel %vm100_vm1, %v1245_v52, 0.0 }
 0xaa5   :  { %1250 = vadd.xlane.f32.xlu1 %v1249_v53 }
 0xb2a   :  { %v1248_v58 = vpop.xlane.xlu0 %1247 }
 0xb2b   :  { %v1252_v59 = vmul.f32 0.03125, %v1248_v58 }
 0xb2d   :  { %v1254_v60 = vadd.f32 1e-06, %v1252_v59 }
 0xb2e   :  { %v1251_v5 = vpop.xlane.xlu1 %1250 }
 0xb2f   :  { %3677 = vrsqrt.f32 %v1254_v60  ;;  %v1253_v61 = vmul.f32 0.03125, %v1251_v5 }
 0xb31   :  { %v1255_v6 = vadd.f32 1e-06, %v1253_v61 }
 0xb33   :  { %3679 = vrsqrt.f32 %v1255_v6 }
 0xb3c   :  { %v3678_v62 = vpop.eup %3677 }
 0xb3d   :  { %v1258_v63 = vmul.f32 %v3678_v62, %v1242_v46 }
 0xb3f   :  { %v1266_v3 = vmul.f32 %v3057_v0, %v1258_v63 }
 0xb40   :  { %v3680_v2 = vpop.eup %3679 }
 0xb41   :  { %v1259_v4 = vmul.f32 %v3680_v2, %v1243_v50  ;;  %v4159_v10 = vadd.f32 %v3058_v8, %v1266_v3 }
 0xb43   :  { %v1267_v9 = vmul.f32 %v3057_v0, %v1259_v4 }
 0xb45   :  { %v4161_v11 = vadd.f32 %v3058_v8, %v1267_v9  ;;  %v3618_v9 = vld [vmem:[%s4538_s24 + $0x78] sm:$0xff]  }
 0xb47   :  { %v4168_v13 = vpack.c.bf16 %v4161_v11, %v4159_v10 }
 0xb49   :  { %3447 = vmatmul.mubr.msk.bf16.vlgmr.msra.gmra.mxu0 %vm100_vm1, %v4168_v13  ;;  %3463 = vmatmul.mubr.msk.bf16.vlgmr.msra.gmra.mxu1 %vm100_vm1, %v4168_v13 }
 0xb4a   :  { %3451 = vmatpush3.bf16.msra.mxu0 %v3616_v12  ;;  %3454 = vmatprep.mubr.msk.bf16.mxu0 %vm3774_vm0, %v3773_v1 }
 0xb4b   :  { %3452 = vmatprep.subr.bf16.mxu0 %v3773_v1  ;;  %3474 = vmatprep.mubr.msk.bf16.mxu1 %vm3774_vm0, %v3773_v1 }
 0xb4e   :  { %3453 = vmatpush3.bf16.msra.mxu0 %v3617_v14 }
 0xb4f   :  { %3466 = vmatprep.subr.bf16.mxu0 %v3773_v1 }
 0xb51   :  { %3455 = vmatmul.mubr.msk.bf16.vlgmr.msra.gmra.mxu0 %vm100_vm1, %v4168_v13 }
 0xb52   :  { %3468 = vmatprep.mubr.msk.bf16.mxu0 %vm3774_vm0, %v3773_v1 }
 0xc09   :  { %v1339_v15 = vpop.f32.mrf.mxu0  ;;  %v1471_v16 = vpop.f32.mrf.mxu1 }
 0xc0a   :  { %v1472_v33 = vadd.f32 %v3082_v28, %v1471_v16  ;;  %v1340_v17 = vadd.f32 %v3064_v31, %v1339_v15  ;;  %v3619_v16 = vld [vmem:[%s4538_s24 + $0x70] sm:$0xff]  }
 0xc0b   :  { %v3448_v18 = vpop.f32.mrf.mxu0  ;;  %v3464_v20 = vpop.f32.mrf.mxu1 }
 0xc0c   :  { %v1600_v21 = vpack.c.bf16 %v1472_v33, %v1472_v33  ;;  %v1478_v39 = vpack.c.bf16 %v1340_v17, %v1340_v17  ;;  %v3620_v18 = vld [vmem:[%s4538_s24 + $0x98] sm:$0xff]  }
 0xc0d   :  { %v1342_v22 = vpop.f32.mrf.mxu0  ;;  %v1474_v23 = vpop.f32.mrf.mxu1 }
 0xc0e   :  { %v1475_v37 = vadd.f32 %v3082_v28, %v1474_v23  ;;  %v1343_v40 = vadd.f32 %v3064_v31, %v1342_v22  ;;  %v1606_v41 = vsel %vm406_vm3, %v1600_v21, 0  ;;  %v3621_v22 = vld [vmem:[%s4538_s24 + $0x90] sm:$0xff]   ;;  %v3622_v23 = vld [vmem:[%s4538_s24 + $0xb8] sm:$0xff]  }
 0xc0f   :  { %v3449_v24 = vpop.f32.mrf.mxu0  ;;  %v3465_v25 = vpop.f32.mrf.mxu1 }
 0xc10   :  { %v1601_v42 = vpack.c.bf16 %v1475_v37, %v1475_v37  ;;  %v1479_v43 = vpack.c.bf16 %v1343_v40, %v1343_v40  ;;  %v3623_v24 = vld [vmem:[%s4538_s24 + $0xb0] sm:$0xff]   ;;  %v3115_v37 = vld [vmem:[%s4540_s26 + $0xb] ss:$0 sm:$0xff] }
 0xc11   :  { %v1405_v26 = vpop.f32.mrf.mxu0 }
 0xc12   :  { %v1406_v27 = vadd.f32 %v3073_v7, %v1405_v26  ;;  %v1652_v44 = vsel %vm406_vm3, %v1601_v42, 0 }
 0xc13   :  { %v3456_v29 = vpop.f32.mrf.mxu0 }
 0xc14   :  { %v1480_v30 = vpack.c.bf16 %v1406_v27, %v1406_v27 }
 0xc15   :  { %v1408_v32 = vpop.f32.mrf.mxu0 }
 0xc16   :  { %v1486_v34 = vsel %vm281_vm2, %v1480_v30, 0  ;;  %v1409_v35 = vadd.f32 %v3073_v7, %v1408_v32 }
 0xc17   :  { %v3457_v36 = vpop.f32.mrf.mxu0  ;;  %3467 = vmatpush3.bf16.xpose.msra.mxu0 %v1486_v34 }
 0xc18   :  { %v1481_v19 = vpack.c.bf16 %v1409_v35, %v1409_v35  ;;  %3478 = vmatprep.subr.bf16.mxu0 %v3773_v1 }
 0xc1a   :  { %v1532_v38 = vsel %vm281_vm2, %v1481_v19, 0 }
 0xc1b   :  { %3473 = vmatpush3.bf16.xpose.msra.mxu1 %v1532_v38 }
 0xc1c   :  { %3484 = vmatprep.subr.bf16.mxu1 %v3773_v1 }
 0xc1e   :  { %3469 = vmatmul.mubr.msk.bf16.vlgmr.msra.gmra.mxu0 %vm281_vm2, %v1478_v39  ;;  %v3097_v39 = vld [vmem:[%s4540_s26 + $0x7] ss:$0 sm:$0xff] }
 0xc1f   :  { %3479 = vmatpush3.bf16.msra.mxu0 %v1606_v41  ;;  %3480 = vmatprep.mubr.msk.bf16.mxu0 %vm3774_vm0, %v3773_v1 }
 0xc20   :  { %3490 = vmatprep.subr.bf16.mxu0 %v3773_v1 }
 0xc22   :  { %3475 = vmatmul.mubr.msk.bf16.vlgmr.msra.gmra.mxu1 %vm281_vm2, %v1479_v43 }
 0xc23   :  { %3485 = vmatpush3.bf16.msra.mxu1 %v1652_v44  ;;  %3486 = vmatprep.mubr.msk.bf16.mxu1 %vm3774_vm0, %v3773_v1 }
 0xc24   :  { %3498 = vmatprep.subr.bf16.mxu1 %v3773_v1 }
 0xcde   :  { %v1522_v45 = vpop.f32.mrf.mxu0 }
 0xcdf   :  { %v1574_v46 = vmul.f32 0.25, %v1522_v45 }
 0xce0   :  { %v3470_v47 = vpop.f32.mrf.mxu0 }
 0xce1   :  { %v1576_v48 = vsel %vm376_vm4, %v1574_v46, -inf }
 0xce2   :  { %v1568_v49 = vpop.f32.mrf.mxu1  ;;  %1577 = vmax.xlane.f32.xlu1 %v1576_v48  ;;  %v1525_v50 = vpop.f32.mrf.mxu0 }
 0xce3   :  { %v1575_v51 = vmul.f32 0.25, %v1568_v49 }
 0xce4   :  { %v3471_v52 = vpop.f32.mrf.mxu0  ;;  %v3476_v53 = vpop.f32.mrf.mxu1 }
 0xce5   :  { %v1579_v54 = vsel %vm376_vm4, %v1575_v51, -inf }
 0xce6   :  { %1580 = vmax.xlane.f32.xlu0 %v1579_v54  ;;  %v1571_v55 = vpop.f32.mrf.mxu1 }
 0xce8   :  { %v3477_v56 = vpop.f32.mrf.mxu1 }
 0xd6b   :  { %v1578_v57 = vpop.xlane.xlu1 %1577 }
 0xd6c   :  { %v1582_v58 = vsub.f32 %v1574_v46, %v1578_v57 }
 0xd6e   :  { %v1584_v59 = vmul.f32 1.442695, %v1582_v58 }
 0xd6f   :  { %v1581_v60 = vpop.xlane.xlu0 %1580 }
 0xd70   :  { %3681 = vpow2.f32 %v1584_v59  ;;  %v1583_v5 = vsub.f32 %v1575_v51, %v1581_v60 }
 0xd72   :  { %v1586_v61 = vmul.f32 1.442695, %v1583_v5 }
 0xd74   :  { %3683 = vpow2.f32 %v1586_v61 }
 0xd7d   :  { %v3682_v6 = vpop.eup %3681 }
 0xd7e   :  { %v1588_v62 = vsel %vm376_vm4, %v3682_v6, 0.0 }
 0xd7f   :  { %1589 = vadd.xlane.f32.xlu1 %v1588_v62 }
 0xd81   :  { %v3684_v63 = vpop.eup %3683 }
 0xd82   :  { %v1591_v0 = vsel %vm376_vm4, %v3684_v63, 0.0 }
 0xd83   :  { %1592 = vadd.xlane.f32.xlu0 %v1591_v0 }
 0xe08   :  { %v1590_v2 = vpop.xlane.xlu1 %1589 }
 0xe09   :  { %3685 = vrcp.f32 %v1590_v2 }
 0xe0c   :  { %v1593_v3 = vpop.xlane.xlu0 %1592 }
 0xe0d   :  { %3687 = vrcp.f32 %v1593_v3 }
 0xe16   :  { %v3686_v4 = vpop.eup %3685 }
 0xe17   :  { %v1596_v8 = vmul.f32 %v3686_v4, %v3682_v6 }
 0xe19   :  { %v1598_v12 = vpack.c.bf16 %v1596_v8, %v1596_v8 }
 0xe1a   :  { %v3688_v14 = vpop.eup %3687 }
 0xe1b   :  { %3481 = vmatmul.mubr.msk.bf16.vlgmr.msra.gmra.mxu0 %vm376_vm4, %v1598_v12  ;;  %v1597_v15 = vmul.f32 %v3688_v14, %v3684_v63 }
 0xe1c   :  { %3491 = vmatpush3.bf16.msra.mxu0 %v3618_v9  ;;  %3494 = vmatprep.mubr.msk.bf16.mxu0 %vm3774_vm0, %v3773_v1 }
 0xe1d   :  { %v1599_v20 = vpack.c.bf16 %v1597_v15, %v1597_v15  ;;  %3492 = vmatprep.subr.bf16.mxu0 %v3773_v1 }
 0xe1f   :  { %3487 = vmatmul.mubr.msk.bf16.vlgmr.msra.gmra.mxu1 %vm376_vm4, %v1599_v20 }
 0xe20   :  { %3493 = vmatpush3.bf16.msra.mxu0 %v3619_v16  ;;  %3499 = vmatpush3.bf16.msra.mxu1 %v3620_v18 }
 0xe21   :  { %3500 = vmatprep.subr.bf16.mxu1 %v3773_v1  ;;  %3506 = vmatprep.subr.bf16.mxu0 %v3773_v1 }
 0xe22   :  { %3502 = vmatprep.mubr.msk.bf16.mxu1 %vm3774_vm0, %v3773_v1 }
 0xe23   :  { %3495 = vmatmul.mubr.msk.bf16.vlgmr.msra.gmra.mxu0 %vm100_vm1, %v4168_v13 }
 0xe24   :  { %3501 = vmatpush3.bf16.msra.mxu1 %v3621_v22  ;;  %3507 = vmatpush3.bf16.msra.mxu0 %v3622_v23 }
 0xe25   :  { %3508 = vmatprep.subr.bf16.mxu0 %v3773_v1  ;;  %3510 = vmatprep.mubr.msk.bf16.mxu0 %vm3774_vm0, %v3773_v1 }
 0xe26   :  { %3514 = vmatprep.subr.bf16.mxu1 %v3773_v1 }
 0xe27   :  { %3503 = vmatmul.mubr.msk.bf16.vlgmr.msra.gmra.mxu1 %vm100_vm1, %v4168_v13 }
 0xe28   :  { %3509 = vmatpush3.bf16.msra.mxu0 %v3623_v24  ;;  %3516 = vmatprep.mubr.msk.bf16.mxu1 %vm3774_vm0, %v3773_v1 }
 0xe29   :  { %3520 = vmatprep.subr.bf16.mxu0 %v3773_v1 }
 0xe2b   :  { %3511 = vmatmul.mubr.msk.bf16.vlgmr.msra.gmra.mxu0 %vm100_vm1, %v4168_v13  ;;  %v3106_v13 = vld [vmem:[%s4540_s26 + $0x9] ss:$0 sm:$0xff] }
 0xe2c   :  { %3522 = vmatprep.mubr.msk.bf16.mxu0 %vm3774_vm0, %v3773_v1 }
 0xedb   :  { %v4256_v25 = vpop.f32.mrf.mxu0 }
 0xedd   :  { %v3482_v7 = vpop.f32.mrf.mxu0 }
 0xedf   :  { %v1645_v26 = vpop.f32.mrf.mxu0  ;;  %v4258_v27 = vpop.f32.mrf.mxu1 }
 0xee0   :  { %v1694_v28 = vpack.c.bf16 %v4258_v27, %v4256_v25 }
 0xee1   :  { %v3483_v29 = vpop.f32.mrf.mxu0  ;;  %v3488_v30 = vpop.f32.mrf.mxu1 }
 0xee3   :  { %v1691_v31 = vpop.f32.mrf.mxu1  ;;  %v1757_v32 = vpop.f32.mrf.mxu0 }
 0xee4   :  { %v1758_v47 = vadd.f32 %v3097_v39, %v1757_v32 }
 0xee5   :  { %v3489_v33 = vpop.f32.mrf.mxu1  ;;  %v3496_v34 = vpop.f32.mrf.mxu0 }
 0xee6   :  { %v1896_v54 = vpack.c.bf16 %v1758_v47, %v1758_v47 }
 0xee7   :  { %v1760_v35 = vpop.f32.mrf.mxu0  ;;  %v1823_v36 = vpop.f32.mrf.mxu1 }
 0xee8   :  { %v1824_v17 = vadd.f32 %v3106_v13, %v1823_v36  ;;  %v1761_v55 = vadd.f32 %v3097_v39, %v1760_v35  ;;  %v3625_v36 = vld [vmem:[%s4541_s5 + $0x18] sm:$0xff]  }
 0xee9   :  { %v3497_v19 = vpop.f32.mrf.mxu0  ;;  %v3504_v21 = vpop.f32.mrf.mxu1 }
 0xeea   :  { %v1898_v38 = vpack.c.bf16 %v1824_v17, %v1824_v17  ;;  %v1897_v58 = vpack.c.bf16 %v1761_v55, %v1761_v55 }
 0xeeb   :  { %v1826_v40 = vpop.f32.mrf.mxu1  ;;  %v1889_v41 = vpop.f32.mrf.mxu0 }
 0xeec   :  { %v1904_v42 = vsel %vm281_vm2, %v1898_v38, 0  ;;  %v1827_v43 = vadd.f32 %v3106_v13, %v1826_v40  ;;  %v1890_v44 = vadd.f32 %v3115_v37, %v1889_v41  ;;  %v3624_v13 = vld [vmem:[%s4541_s5 + $0x10] sm:$0xff]  }
 0xeed   :  { %v3505_v45 = vpop.f32.mrf.mxu1  ;;  %v3512_v46 = vpop.f32.mrf.mxu0  ;;  %3515 = vmatpush3.bf16.xpose.msra.mxu1 %v1904_v42 }
 0xeee   :  { %v1899_v48 = vpack.c.bf16 %v1827_v43, %v1827_v43  ;;  %3526 = vmatprep.subr.bf16.mxu1 %v3773_v1  ;;  %v2018_v51 = vpack.c.bf16 %v1890_v44, %v1890_v44  ;;  %v3130_v45 = vld [vmem:[%s4542_s7 + $0x1] ss:$0 sm:$0xff] }
 0xeef   :  { %v1892_v49 = vpop.f32.mrf.mxu0 }
 0xef0   :  { %v1950_v50 = vsel %vm281_vm2, %v1899_v48, 0  ;;  %v1893_v52 = vadd.f32 %v3115_v37, %v1892_v49  ;;  %v2024_v56 = vsel %vm406_vm3, %v2018_v51, 0 }
 0xef1   :  { %v3513_v53 = vpop.f32.mrf.mxu0  ;;  %3521 = vmatpush3.bf16.xpose.msra.mxu0 %v1950_v50 }
 0xef2   :  { %3532 = vmatprep.subr.bf16.mxu0 %v3773_v1  ;;  %v2019_v57 = vpack.c.bf16 %v1893_v52, %v1893_v52 }
 0xef4   :  { %3517 = vmatmul.mubr.msk.bf16.vlgmr.msra.gmra.mxu1 %vm281_vm2, %v1896_v54  ;;  %v2070_v59 = vsel %vm406_vm3, %v2019_v57, 0 }
 0xef5   :  { %3527 = vmatpush3.bf16.msra.mxu1 %v2024_v56  ;;  %3528 = vmatprep.mubr.msk.bf16.mxu1 %vm3774_vm0, %v3773_v1 }
 0xef6   :  { %3538 = vmatprep.subr.bf16.mxu1 %v3773_v1 }
 0xef8   :  { %3523 = vmatmul.mubr.msk.bf16.vlgmr.msra.gmra.mxu0 %vm281_vm2, %v1897_v58 }
 0xef9   :  { %3533 = vmatpush3.bf16.msra.mxu0 %v2070_v59  ;;  %3534 = vmatprep.mubr.msk.bf16.mxu0 %vm3774_vm0, %v3773_v1 }
 0xefa   :  { %3544 = vmatprep.subr.bf16.mxu0 %v3773_v1 }
 0xfb4   :  { %v1940_v60 = vpop.f32.mrf.mxu1 }
 0xfb5   :  { %v1992_v5 = vmul.f32 0.25, %v1940_v60 }
 0xfb6   :  { %v3518_v61 = vpop.f32.mrf.mxu1 }
 0xfb7   :  { %v1994_v6 = vsel %vm376_vm4, %v1992_v5, -inf }
 0xfb8   :  { %1995 = vmax.xlane.f32.xlu0 %v1994_v6  ;;  %v1943_v62 = vpop.f32.mrf.mxu1  ;;  %v1986_v63 = vpop.f32.mrf.mxu0 }
 0xfb9   :  { %v1993_v0 = vmul.f32 0.25, %v1986_v63 }
 0xfba   :  { %v3519_v2 = vpop.f32.mrf.mxu1  ;;  %v3524_v3 = vpop.f32.mrf.mxu0 }
 0xfbb   :  { %v1997_v4 = vsel %vm376_vm4, %v1993_v0, -inf  ;;  %v3628_v2 = vld [vmem:[%s4507_s9 + $0x38] sm:$0xff]  }
 0xfbc   :  { %1998 = vmax.xlane.f32.xlu1 %v1997_v4  ;;  %v1989_v8 = vpop.f32.mrf.mxu0 }
 0xfbe   :  { %v3525_v9 = vpop.f32.mrf.mxu0 }
0x1041   :  { %v1996_v12 = vpop.xlane.xlu0 %1995 }
0x1042   :  { %v2000_v14 = vsub.f32 %v1992_v5, %v1996_v12 }
0x1044   :  { %v2002_v15 = vmul.f32 1.442695, %v2000_v14 }
0x1045   :  { %v1999_v16 = vpop.xlane.xlu1 %1998 }
0x1046   :  { %3689 = vpow2.f32 %v2002_v15  ;;  %v2001_v18 = vsub.f32 %v1993_v0, %v1999_v16  ;;  %v3627_v0 = vld [vmem:[%s4543_s3 + $0x10] sm:$0xff]  }
0x1048   :  { %v2004_v20 = vmul.f32 1.442695, %v2001_v18  ;;  %v3133_v18 = vld [vmem:[%s4544_s6 + $0x2] ss:$0 sm:$0xff] }
0x104a   :  { %3691 = vpow2.f32 %v2004_v20 }
0x1053   :  { %v3690_v22 = vpop.eup %3689 }
0x1054   :  { %v2006_v23 = vsel %vm376_vm4, %v3690_v22, 0.0 }
0x1055   :  { %2007 = vadd.xlane.f32.xlu0 %v2006_v23 }
0x1057   :  { %v3692_v24 = vpop.eup %3691 }
0x1058   :  { %v2009_v7 = vsel %vm376_vm4, %v3692_v24, 0.0 }
0x1059   :  { %2010 = vadd.xlane.f32.xlu1 %v2009_v7 }
0x10de   :  { %v2008_v26 = vpop.xlane.xlu0 %2007 }
0x10df   :  { %3693 = vrcp.f32 %v2008_v26 }
0x10e2   :  { %v2011_v29 = vpop.xlane.xlu1 %2010 }
0x10e3   :  { %3695 = vrcp.f32 %v2011_v29 }
0x10ec   :  { %v3694_v30 = vpop.eup %3693 }
0x10ed   :  { %v2014_v31 = vmul.f32 %v3694_v30, %v3690_v22 }
0x10ef   :  { %v2016_v32 = vpack.c.bf16 %v2014_v31, %v2014_v31  ;;  %v3629_v31 = vld [vmem:[%s4507_s9 + $0x30] sm:$0xff]  }
0x10f0   :  { %v3696_v33 = vpop.eup %3695 }
0x10f1   :  { %3529 = vmatmul.mubr.msk.bf16.vlgmr.msra.gmra.mxu1 %vm376_vm4, %v2016_v32  ;;  %v2015_v34 = vmul.f32 %v3696_v33, %v3692_v24  ;;  %v3134_v24 = vld [vmem:[%s4544_s6 + $0x3] ss:$0 sm:$0xff]  ;;  %v3630_v32 = vld [vmem:[%s4507_s9 + $0x28] sm:$0xff]  }
0x10f2   :  { %3540 = vmatprep.mubr.msk.bf16.mxu1 %vm3774_vm0, %v3773_v1  ;;  %3539 = vmatpush3.bf16.msra.mxu1 %v3625_v36  ;;  %v3631_v33 = vld [vmem:[%s4507_s9 + $0x20] sm:$0xff]  }
0x10f3   :  { %v2017_v35 = vpack.c.bf16 %v2015_v34, %v2015_v34  ;;  %3550 = vmatprep.subr.bf16.mxu1 %v3773_v1  ;;  %v3140_v34 = vld [vmem:[%s4506_s8 + $0x1] ss:$0 sm:$0xff] }
0x10f5   :  { %3535 = vmatmul.mubr.msk.bf16.vlgmr.msra.gmra.mxu0 %vm376_vm4, %v2017_v35 }
0x10f6   :  { %3545 = vmatpush3.bf16.msra.mxu0 %v3624_v13  ;;  %3546 = vmatprep.mubr.msk.bf16.mxu0 %vm3774_vm0, %v3773_v1 }
0x10f7   :  { %3558 = vmatprep.subr.bf16.mxu0 %v3773_v1 }
0x10fd   :  { %3547 = vmatmul.mubr.msk.bf16.vlgmr.msra.gmra.mxu0 %vm281_vm2, %v1694_v28 }
0x10fe   :  { %3566 = vmatprep.mubr.msk.bf16.mxu0 %vm3774_vm0, %v3773_v1  ;;  %3559 = vmatpush3.bf16.msra.mxu0 %v3628_v2 }
0x10ff   :  { %3560 = vmatprep.subr.bf16.mxu0 %v3773_v1 }
0x1102   :  { %3561 = vmatpush3.bf16.msra.mxu0 %v3629_v31  ;;  %v3645_v31 = vld [vmem:[%s4512_s14 + $0x20] sm:$0xff]  }
0x1103   :  { %3562 = vmatprep.subr.bf16.mxu0 %v3773_v1 }
0x1106   :  { %3563 = vmatpush3.bf16.msra.mxu0 %v3630_v32  ;;  %v3646_v32 = vld [vmem:[%s4512_s14 + $0x58] sm:$0xff]  }
0x1107   :  { %3564 = vmatprep.subr.bf16.mxu0 %v3773_v1 }
0x110a   :  { %3565 = vmatpush3.bf16.msra.mxu0 %v3631_v33  ;;  %v3647_v33 = vld [vmem:[%s4512_s14 + $0x18] sm:$0xff]  }
0x110b   :  { %3570 = vmatprep.subr.bf16.mxu0 %v3773_v1 }
0x11b1   :  { %v2060_v17 = vpop.f32.mrf.mxu1 }
0x11b3   :  { %v3530_v19 = vpop.f32.mrf.mxu1 }
0x11b5   :  { %v2063_v21 = vpop.f32.mrf.mxu1  ;;  %v2106_v37 = vpop.f32.mrf.mxu0 }
0x11b6   :  { %v2112_v38 = vpack.c.bf16 %v2106_v37, %v2060_v17 }
0x11b7   :  { %v3531_v39 = vpop.f32.mrf.mxu1  ;;  %v3536_v40 = vpop.f32.mrf.mxu0 }
0x11b8   :  { %3541 = vmatmul.mubr.msk.bf16.vlgmr.msra.gmra.mxu1 %vm281_vm2, %v2112_v38  ;;  %v3153_v40 = vld [vmem:[%s4508_s10 + $0x1] ss:$0 sm:$0xff] }
0x11b9   :  { %v2109_v25 = vpop.f32.mrf.mxu0  ;;  %3554 = vmatprep.mubr.msk.bf16.mxu1 %vm3774_vm0, %v3773_v1 }
0x11bb   :  { %v3537_v27 = vpop.f32.mrf.mxu0 }
0x11bd   :  { %v2209_v28 = vpop.f32.mrf.mxu0 }
0x11bf   :  { %v3548_v41 = vpop.f32.mrf.mxu0 }
0x11c1   :  { %v2212_v42 = vpop.f32.mrf.mxu0 }
0x11c3   :  { %v3549_v43 = vpop.f32.mrf.mxu0 }
0x1278   :  { %v2159_v44 = vpop.f32.mrf.mxu1 }
0x1279   :  { %v2210_v46 = vadd.f32 %v2209_v28, %v2159_v44 }
0x127a   :  { %v3542_v47 = vpop.f32.mrf.mxu1 }
0x127b   :  { %v2224_v48 = vadd.f32 %v3130_v45, %v2210_v46 }
0x127c   :  { %v2162_v49 = vpop.f32.mrf.mxu1 }
0x127d   :  { %v2213_v50 = vadd.f32 %v2212_v42, %v2162_v49  ;;  %v2226_v51 = vadd.f32 %v2224_v48, %v4159_v10 }
0x127e   :  { %v3543_v52 = vpop.f32.mrf.mxu1 }
0x127f   :  { %v2225_v53 = vadd.f32 %v3130_v45, %v2213_v50  ;;  %v2232_v54 = vsel %vm100_vm1, %v2226_v51, 0.0 }
0x1280   :  { %2233 = vadd.xlane.f32.xlu0 %v2232_v54 }
0x1281   :  { %v2227_v55 = vadd.f32 %v2225_v53, %v4161_v11  ;;  %v3626_v11 = vld [vmem:[%s4543_s3 + $0x18] sm:$0xff]  }
0x1282   :  { %3551 = vmatpush3.bf16.msra.mxu1 %v3626_v11 }
0x1283   :  { %v2235_v56 = vsel %vm100_vm1, %v2227_v55, 0.0  ;;  %3552 = vmatprep.subr.bf16.mxu1 %v3773_v1 }
0x1284   :  { %2236 = vadd.xlane.f32.xlu1 %v2235_v56 }
0x1286   :  { %3553 = vmatpush3.bf16.msra.mxu1 %v3627_v0 }
0x1309   :  { %v2234_v57 = vpop.xlane.xlu0 %2233 }
0x130a   :  { %v2238_v58 = vmul.f32 0.03125, %v2234_v57 }
0x130c   :  { %v2240_v59 = vsub.f32 %v2226_v51, %v2238_v58  ;;  %v3634_v58 = vld [vmem:[%s4510_s12 + $0x14] ss:$8 sps:$4 sm:$0xff]  }
0x130d   :  { %v2237_v60 = vpop.xlane.xlu1 %2236  ;;  %2532 = vmatprep.subr.bf16.mxu1 %v3634_v58 }
0x130e   :  { %v2239_v5 = vmul.f32 0.03125, %v2237_v60  ;;  %v2242_v61 = vmul.f32 %v2240_v59, %v2240_v59  ;;  %v3637_v60 = vld [vmem:[%s4510_s12 + $0x4] ss:$8 sps:$4 sm:$0xff]  }
0x1310   :  { %v2241_v6 = vsub.f32 %v2227_v55, %v2239_v5  ;;  %v2244_v62 = vsel %vm100_vm1, %v2242_v61, 0.0  ;;  %v3635_v5 = vld [vmem:[%s4510_s12] ss:$8 sps:$4 sm:$0xff]   ;;  %v3775_v61 = vmov 0  }
0x1311   :  { %2245 = vadd.xlane.f32.xlu0 %v2244_v62 }
0x1312   :  { %v2243_v10 = vmul.f32 %v2241_v6, %v2241_v6 }
0x1314   :  { %v2247_v63 = vsel %vm100_vm1, %v2243_v10, 0.0 }
0x1315   :  { %2248 = vadd.xlane.f32.xlu1 %v2247_v63 }
0x139a   :  { %v2246_v3 = vpop.xlane.xlu0 %2245 }
0x139b   :  { %v2250_v4 = vmul.f32 0.03125, %v2246_v3 }
0x139d   :  { %v2252_v8 = vadd.f32 1e-06, %v2250_v4 }
0x139e   :  { %v2249_v9 = vpop.xlane.xlu1 %2248 }
0x139f   :  { %3697 = vrsqrt.f32 %v2252_v8  ;;  %v2251_v12 = vmul.f32 0.03125, %v2249_v9  ;;  %v3161_v8 = vld [vmem:[%s4509_s11 + $0x2] ss:$0 sm:$0xff] }
0x13a1   :  { %v2253_v14 = vadd.f32 1e-06, %v2251_v12 }
0x13a3   :  { %3699 = vrsqrt.f32 %v2253_v14 }
0x13ac   :  { %v3698_v15 = vpop.eup %3697 }
0x13ad   :  { %v2256_v16 = vmul.f32 %v3698_v15, %v2240_v59  ;;  %v3632_v59 = vld [vmem:[%s4510_s12 + $0x10] ss:$8 sps:$4 sm:$0xff]   ;;  %v3162_v15 = vld [vmem:[%s4509_s11 + $0x3] ss:$0 sm:$0xff]  ;;  %s4545_s12 = sld [smem:[#allocation10_spill]] }
0x13af   :  { %v2264_v23 = vmul.f32 %v3133_v18, %v2256_v16 }
0x13b0   :  { %v3700_v20 = vpop.eup %3699 }
0x13b1   :  { %v2257_v22 = vmul.f32 %v3700_v20, %v2241_v6  ;;  %v2272_v26 = vadd.f32 %v3134_v24, %v2264_v23  ;;  %v3638_v6 = vld [vmem:[%s4512_s14 + $0x78] sm:$0xff]  }
0x13b3   :  { %v2265_v7 = vmul.f32 %v3133_v18, %v2257_v22  ;;  %v3639_v22 = vld [vmem:[%s4512_s14 + $0x38] sm:$0xff]  }
0x13b5   :  { %v2273_v29 = vadd.f32 %v3134_v24, %v2265_v7  ;;  %v3640_v24 = vld [vmem:[%s4512_s14 + $0x70] sm:$0xff]  }
0x13b6   :  { %v3641_v7 = vld [vmem:[%s4512_s14 + $0x30] sm:$0xff]  }
0x13b7   :  { %v2281_v30 = vpack.c.bf16 %v2273_v29, %v2272_v26 }
0x13b9   :  { %3555 = vmatmul.mubr.msk.bf16.vlgmr.msra.gmra.mxu1 %vm100_vm1, %v2281_v30  ;;  %v3644_v30 = vld [vmem:[%s4512_s14 + $0x60] sm:$0xff]  }
0x13ba   :  { %2533 = vmatpush1.bf16.msra.mxu1 %v3632_v59  ;;  %2552 = vmatprep.mubr.bf16.mxu1 %v3775_v61  ;;  %v2745_v59 = vld [vmem:[%s4545_s12] sm:$0xff] }
0x13bb   :  { %2534 = vmatprep.subr.bf16.mxu1 %v3637_v60 }
0x13be   :  { %2535 = vmatpush1.bf16.msra.mxu1 %v3635_v5 }
0x13bf   :  { %3287 = vmatprep.subr.bf16.mxu1 %v3638_v6 }
0x1479   :  { %v2337_v13 = vpop.f32.mrf.mxu1 }
0x147a   :  { %v2338_v36 = vadd.f32 %v3140_v34, %v2337_v13  ;;  %v3649_v13 = vld [vmem:[%s4512_s14 + $0x10] sm:$0xff]  }
0x147b   :  { %v3556_v35 = vpop.f32.mrf.mxu1 }
0x147c   :  { %v2344_v37 = vmax.f32 %v2338_v36, 0.0  ;;  %v3650_v35 = vld [vmem:[%s4512_s14 + $0x48] sm:$0xff]  }
0x147d   :  { %v2340_v17 = vpop.f32.mrf.mxu1  ;;  %v3651_v36 = vld [vmem:[%s4512_s14 + $0x8] sm:$0xff]  }
0x147e   :  { %v2341_v19 = vadd.f32 %v3140_v34, %v2340_v17  ;;  %v3648_v34 = vld [vmem:[%s4512_s14 + $0x50] sm:$0xff]   ;;  %v3652_v17 = vld [vmem:[%s4512_s14 + $0x40] sm:$0xff]  }
0x147f   :  { %v3557_v21 = vpop.f32.mrf.mxu1 }
0x1480   :  { %v2345_v38 = vmax.f32 %v2341_v19, 0.0  ;;  %v3653_v19 = vld [vmem:[%s4512_s14] sm:$0xff]   ;;  %v2487_v21 = vlaneseq }
0x1482   :  { %v2357_v39 = vpack.c.bf16 %v2345_v38, %v2344_v37  ;;  %v2488_v37 = vshrl.u32 %v2487_v21, 7 }
0x1484   :  { %3567 = vmatmul.mubr.msk.bf16.vlgmr.msra.gmra.mxu0 %vm1184_vm5, %v2357_v39  ;;  %v2493_v38 = vsub.s32 1, %v2488_v37  ;;  %v2489_v39 = vsub.s32 0, %v2488_v37 }
0x1485   :  { %3572 = vmatprep.mubr.msk.bf16.mxu0 %vm3774_vm0, %v3773_v1 }
0x1544   :  { %v2425_v25 = vpop.f32.mrf.mxu0 }
0x1545   :  { %v2426_v27 = vadd.f32 %v3153_v40, %v2425_v25 }
0x1546   :  { %v3568_v28 = vpop.f32.mrf.mxu0 }
0x1547   :  { %v2432_v41 = vadd.f32 %v2426_v27, %v2272_v26  ;;  %v3642_v26 = vld [vmem:[%s4512_s14 + $0x68] sm:$0xff]  }
0x1548   :  { %v2428_v42 = vpop.f32.mrf.mxu0 }
0x1549   :  { %v2429_v43 = vadd.f32 %v3153_v40, %v2428_v42  ;;  %v2438_v44 = vsel %vm100_vm1, %v2432_v41, 0.0  ;;  %v2484_v40 = vld [vmem:[%s4511_s13] sm:$0x3] }
0x154a   :  { %2439 = vadd.xlane.f32.xlu0 %v2438_v44  ;;  %v3569_v45 = vpop.f32.mrf.mxu0  ;;  %v2494_v27 = vrot.slane %v2484_v40, %v2493_v38  ;;  %v2490_v28 = vrot.slane %v2484_v40, %v2489_v39 }
0x154b   :  { %v2433_v46 = vadd.f32 %v2429_v43, %v2273_v29  ;;  %v3643_v29 = vld [vmem:[%s4512_s14 + $0x28] sm:$0xff]  }
0x154d   :  { %v2441_v47 = vsel %vm100_vm1, %v2433_v46, 0.0 }
0x154e   :  { %2442 = vadd.xlane.f32.xlu1 %v2441_v47 }
0x15d3   :  { %v2440_v48 = vpop.xlane.xlu0 %2439 }
0x15d4   :  { %v2444_v49 = vmul.f32 0.03125, %v2440_v48 }
0x15d6   :  { %v2446_v50 = vsub.f32 %v2432_v41, %v2444_v49 }
0x15d7   :  { %v2443_v51 = vpop.xlane.xlu1 %2442 }
0x15d8   :  { %v2445_v52 = vmul.f32 0.03125, %v2443_v51  ;;  %v2448_v53 = vmul.f32 %v2446_v50, %v2446_v50 }
0x15da   :  { %v2447_v54 = vsub.f32 %v2433_v46, %v2445_v52  ;;  %v2450_v55 = vsel %vm100_vm1, %v2448_v53, 0.0 }
0x15db   :  { %2451 = vadd.xlane.f32.xlu0 %v2450_v55 }
0x15dc   :  { %v2449_v56 = vmul.f32 %v2447_v54, %v2447_v54 }
0x15de   :  { %v2453_v57 = vsel %vm100_vm1, %v2449_v56, 0.0  ;;  %v3168_v56 = vld [vmem:[%s4513_s15] ss:$0 sm:$0xff] }
0x15df   :  { %2454 = vadd.xlane.f32.xlu1 %v2453_v57 }
0x1664   :  { %v2452_v62 = vpop.xlane.xlu0 %2451 }
0x1665   :  { %v2456_v10 = vmul.f32 0.03125, %v2452_v62 }
0x1667   :  { %v2458_v63 = vadd.f32 1e-06, %v2456_v10  ;;  %v2746_v10 = vld [vmem:[%s4545_s12 + $0x8] sm:$0xff] }
0x1668   :  { %v2455_v11 = vpop.xlane.xlu1 %2454 }
0x1669   :  { %3701 = vrsqrt.f32 %v2458_v63  ;;  %v2457_v0 = vmul.f32 0.03125, %v2455_v11 }
0x166b   :  { %v2459_v2 = vadd.f32 1e-06, %v2457_v0 }
0x166d   :  { %3703 = vrsqrt.f32 %v2459_v2  ;;  %v3655_v2 = vld [vmem:[%s4516_s18 + $0x8] sm:$0xff]  }
0x1676   :  { %v3702_v3 = vpop.eup %3701 }
0x1677   :  { %v2462_v4 = vmul.f32 %v3702_v3, %v2446_v50  ;;  %v3656_v3 = vld [vmem:[%s4516_s18] sm:$0xff]  }
0x1679   :  { %v2470_v14 = vmul.f32 %v3161_v8, %v2462_v4  ;;  %v3185_v4 = vld [vmem:[%s4515_s17] ss:$0 sm:$0xff]  ;;  %s3776_s17 = smov [#allocation4]  }
0x167a   :  { %v3704_v9 = vpop.eup %3703  ;;  %s2949_s18 = sshll.u32 %s3776_s17, 4  ;;  %s2950_s18 = int_to_ptr.vmem [resolvable:$true] %s2949_s18 }
0x167b   :  { %v2463_v12 = vmul.f32 %v3704_v9, %v2447_v54  ;;  %v2478_v18 = vadd.f32 %v3162_v15, %v2470_v14  ;;  %v3654_v54 = vld [vmem:[%s4514_s16] sm:$0xff]   ;;  %s3709_s11 = scalar_lea.vmem %s2950_s18, 256  ;;  %p3714_p1 = scmp.lt.s32.totalorder %s2950_s18, %s2950_s18 }
0x167c   :  { %3571 = vmatpush3.bf16.msra.mxu0 %v3654_v54  ;;  %p3710_p0 = scmp.ne.s32.totalorder %s2950_s18, %s3709_s11  ;;  %p3715_p2 = scmp.lt.s32.totalorder %s3709_s11, %s3709_s11 }
0x167d   :  { %v2471_v16 = vmul.f32 %v3161_v8, %v2463_v12  ;;  %3576 = vmatprep.subr.bf16.mxu0 %v3773_v1 }
0x167e   :  { %p3716_p3 = por %p3715_p2, %p3714_p1 }
0x167f   :  { %v2479_v20 = vadd.f32 %v3162_v15, %v2471_v16 }
0x1680   :  { %p3717_p4 = pnand %p3716_p3, %p3710_p0 }
0x1681   :  { %v2485_v23 = vpack.c.bf16 %v2479_v20, %v2478_v18 }
0x1683   :  { %3167 = vmatmul.mubr.msk.bf16.vlgmr.msra.gmra.mxu1 %vm100_vm1, %v2485_v23 }
0x1684   :  { %3288 = vmatpush3.bf16.msra.mxu1 %v3639_v22 }
0x1685   :  { %3289 = vmatprep.subr.bf16.mxu1 %v3640_v24 }
0x1688   :  { %3290 = vmatpush3.bf16.msra.mxu1 %v3641_v7 }
0x1689   :  { %3291 = vmatprep.subr.bf16.mxu1 %v3642_v26 }
0x168c   :  { %3292 = vmatpush3.bf16.msra.mxu1 %v3643_v29 }
0x168d   :  { %3293 = vmatprep.subr.bf16.mxu1 %v3644_v30 }
0x1690   :  { %3294 = vmatpush3.bf16.msra.mxu1 %v3645_v31 }
0x1691   :  { %3295 = vmatprep.subr.bf16.mxu1 %v3646_v32 }
0x1694   :  { %3296 = vmatpush3.bf16.msra.mxu1 %v3647_v33 }
0x1695   :  { %3297 = vmatprep.subr.bf16.mxu1 %v3648_v34 }
0x1698   :  { %3298 = vmatpush3.bf16.msra.mxu1 %v3649_v13 }
0x1699   :  { %3299 = vmatprep.subr.bf16.mxu1 %v3650_v35 }
0x169c   :  { %3300 = vmatpush3.bf16.msra.mxu1 %v3651_v36 }
0x169d   :  { %3301 = vmatprep.subr.bf16.mxu1 %v3652_v17 }
0x16a0   :  { %3302 = vmatpush3.bf16.msra.mxu1 %v3653_v19 }
0x1743   :  { %v2554_v25 = vpop.f32.mrf.mxu1 }
0x1744   :  { %v2555_v45 = vadd.f32 %v2554_v25, %v2490_v28 }
0x1745   :  { %v2556_v41 = vpop.f32.mrf.mxu1 }
0x1746   :  { %v2557_v43 = vadd.f32 %v2556_v41, %v2494_v27  ;;  %v2563_v51 = vmax.f32 %v2555_v45, 0.0 }
0x1747   :  { %v2558_v42 = vpop.f32.mrf.mxu1 }
0x1748   :  { %v2559_v44 = vadd.f32 %v2558_v42, %v2490_v28  ;;  %v2564_v49 = vmax.f32 %v2557_v43, 0.0 }
0x1749   :  { %v2560_v46 = vpop.f32.mrf.mxu1 }
0x174a   :  { %v2561_v47 = vadd.f32 %v2560_v46, %v2494_v27  ;;  %v2565_v48 = vmax.f32 %v2559_v44, 0.0 }
0x174c   :  { %v2566_v50 = vmax.f32 %v2561_v47, 0.0  ;;  %v2600_v53 = vpack.c.bf16 %v2565_v48, %v2563_v51 }
0x174e   :  { %v2601_v52 = vpack.c.bf16 %v2566_v50, %v2564_v49 }
0x1750   :  { %2736 = vmatprep.mubr.bf16.mxu1 %v2601_v52 }
0x1751   :  { %2737 = vmatmul.mubr.bf16.vlgmr.msra.gmra.mxu1 %v2600_v53 }
0x1811   :  { %v3303_v55 = vpop.f32.mrf.mxu1 }
0x1813   :  { %v3304_v57 = vpop.f32.mrf.mxu1 }
0x1814   :  { %v3305_v58 = vadd.f32 %v3304_v57, %v3303_v55 }
0x1815   :  { %v3306_v60 = vpop.f32.mrf.mxu1 }
0x1816   :  { %v2739_v5 = vadd.f32 %v3305_v58, %v3168_v56 }
0x1817   :  { %v3307_v61 = vpop.f32.mrf.mxu1 }
0x1818   :  { %v2747_v6 = vadd.f32 %v2745_v59, %v2739_v5  ;;  %2879 = vst.msk [vmem:[#allocation2] sm:$0xff] %vm281_vm2, %v2739_v5  ;;  %v3308_v62 = vadd.f32 %v3307_v61, %v3306_v60 }
0x181a   :  { %2881 = vst.msk [vmem:[#allocation4] sm:$0xff] %vm281_vm2, %v2747_v6  ;;  %v2742_v63 = vadd.f32 %v3308_v62, %v3168_v56 }
0x181c   :  { %v2748_v11 = vadd.f32 %v2746_v10, %v2742_v63  ;;  %2880 = vst.msk [vmem:[#allocation2 + $0x8] sm:$0xff] %vm281_vm2, %v2742_v63 }
0x181e   :  { %v2752_v0 = vpack.c.bf16 %v2748_v11, %v2747_v6  ;;  %2882 = vst.msk [vmem:[#allocation4 + $0x8] sm:$0xff] %vm281_vm2, %v2748_v11 }
0x1820   :  { %3573 = vmatmul.mubr.msk.bf16.vlgmr.msra.gmra.mxu0 %vm281_vm2, %v2752_v0 }
0x1821   :  { %3580 = vmatprep.mubr.msk.bf16.mxu0 %vm3774_vm0, %v3773_v1  ;;  %3577 = vmatpush3.bf16.msra.mxu0 %v3655_v2 }
0x1822   :  { %3578 = vmatprep.subr.bf16.mxu0 %v3773_v1  ;;  %v3188_v1 = vld [vmem:[%s4517_s19] ss:$0 sm:$0xff]  ;;  %s3777_s19 = smov [#allocation2]  }
0x1823   :  { %s2937_s8 = sshll.u32 %s3777_s19, 4  ;;  %s2938_s8 = int_to_ptr.vmem [resolvable:$true] %s2937_s8 }
0x1825   :  { %3579 = vmatpush3.bf16.msra.mxu0 %v3656_v3 }
0x18e0   :  { %v2802_v8 = vpop.f32.mrf.mxu0 }
0x18e1   :  { %v2803_v12 = vadd.f32 %v3185_v4, %v2802_v8 }
0x18e2   :  { %v3574_v9 = vpop.f32.mrf.mxu0 }
0x18e3   :  { %v2809_v18 = vmax.f32 %v2803_v12, 0.0 }
0x18e4   :  { %v2805_v14 = vpop.f32.mrf.mxu0 }
0x18e5   :  { %v2806_v15 = vadd.f32 %v3185_v4, %v2805_v14 }
0x18e6   :  { %v3575_v16 = vpop.f32.mrf.mxu0 }
0x18e7   :  { %v2810_v20 = vmax.f32 %v2806_v15, 0.0 }
0x18e9   :  { %v2816_v22 = vpack.c.bf16 %v2810_v20, %v2809_v18 }
0x18eb   :  { %3581 = vmatmul.mubr.msk.bf16.vlgmr.msra.gmra.mxu0 %vm100_vm1, %v2816_v22 }
0x19ab   :  { %v2872_v23 = vpop.f32.mrf.mxu0 }
0x19ac   :  { %v2873_v24 = vadd.f32 %v3188_v1, %v2872_v23 }
0x19ad   :  { %v3582_v7 = vpop.f32.mrf.mxu0 }
0x19ae   :  { %v2883_v26 = vadd.f32 %v2873_v24, %v2809_v18 }
0x19af   :  { %v2875_v29 = vpop.f32.mrf.mxu0 }
0x19b0   :  { %v2876_v30 = vadd.f32 %v3188_v1, %v2875_v29  ;;  %v2888_v31 = vsel %vm100_vm1, %v2883_v26, 0.0 }
0x19b1   :  { %2889 = vadd.xlane.f32.xlu0 %v2888_v31  ;;  %v3583_v32 = vpop.f32.mrf.mxu0 }
0x19b2   :  { %v2884_v33 = vadd.f32 %v2876_v30, %v2810_v20 }
0x19b4   :  { %v2891_v34 = vsel %vm100_vm1, %v2884_v33, 0.0 }
0x19b5   :  { %2892 = vadd.xlane.f32.xlu1 %v2891_v34 }
0x1a3a   :  { %v2890_v13 = vpop.xlane.xlu0 %2889 }
0x1a3b   :  { %v2894_v35 = vmul.f32 0.03125, %v2890_v13 }
0x1a3d   :  { %v2896_v36 = vsub.f32 %v2883_v26, %v2894_v35 }
0x1a3e   :  { %v2893_v17 = vpop.xlane.xlu1 %2892 }
0x1a3f   :  { %v2895_v19 = vmul.f32 0.03125, %v2893_v17  ;;  %v2898_v21 = vmul.f32 %v2896_v36, %v2896_v36 }
0x1a41   :  { %v2897_v37 = vsub.f32 %v2884_v33, %v2895_v19  ;;  %v2900_v38 = vsel %vm100_vm1, %v2898_v21, 0.0 }
0x1a42   :  { %2901 = vadd.xlane.f32.xlu0 %v2900_v38 }
0x1a43   :  { %v2899_v39 = vmul.f32 %v2897_v37, %v2897_v37 }
0x1a45   :  { %v2903_v40 = vsel %vm100_vm1, %v2899_v39, 0.0 }
0x1a46   :  { %2904 = vadd.xlane.f32.xlu1 %v2903_v40 }
0x1a47   :  { %3720 = shalt.err (!%p3717_p4)
}
0x1a48   :  { %s3778_s10 = smov 128   ;;  %s3779_s0 = smov 8  }
0x1a49   :  { %2955 = dma.vmem_to_hbm [thread:$0]  %s2950_s18, 256, %s4520_s22, [#allocation5], %s3778_s10, %s3778_s10, %s3779_s0  }
0x1a4a   :  { %s3729_s30 = scalar_lea.vmem %s2938_s8, 256  ;;  %p3734_p6 = scmp.lt.s32.totalorder %s2938_s8, %s2938_s8 }
0x1a4b   :  { %p3730_p5 = scmp.ne.s32.totalorder %s2938_s8, %s3729_s30  ;;  %p3735_p7 = scmp.lt.s32.totalorder %s3729_s30, %s3729_s30 }
0x1a4d   :  { %p3736_p8 = por %p3735_p7, %p3734_p6 }
0x1a4f   :  { %p3737_p9 = pnand %p3736_p8, %p3730_p5 }
0x1a51   :  { %3740 = shalt.err (!%p3737_p9)
}
0x1a52   :  { %2943 = dma.vmem_to_hbm [thread:$0]  %s2938_s8, 256, %s4519_s21, [#allocation3], %s3778_s10, %s3778_s10, %s3779_s0  }
0x1a53   :  { %v3193_v45 = vld [vmem:[%s4518_s20] ss:$0 sm:$0xff]  ;;  %v3194_v47 = vld [vmem:[%s4518_s20 + $0x1] ss:$0 sm:$0xff]  ;;  %s3780_s21 = smov [#allocation6]  }
0x1a54   :  { %s2961_s2 = sshll.u32 %s3780_s21, 4  ;;  %s2962_s2 = int_to_ptr.vmem [resolvable:$true] %s2961_s2 }
0x1a55   :  { %s3749_s12 = scalar_lea.vmem %s2962_s2, 256  ;;  %p3754_p11 = scmp.lt.s32.totalorder %s2962_s2, %s2962_s2 }
0x1a56   :  { %p3750_p10 = scmp.ne.s32.totalorder %s2962_s2, %s3749_s12  ;;  %p3755_p12 = scmp.lt.s32.totalorder %s3749_s12, %s3749_s12 }
0x1a58   :  { %p3756_p13 = por %p3755_p12, %p3754_p11 }
0x1a5a   :  { %p3757_p0 = pnand %p3756_p13, %p3750_p10 }
0x1acb   :  { %v2902_v25 = vpop.xlane.xlu0 %2901 }
0x1acc   :  { %v2906_v27 = vmul.f32 0.03125, %v2902_v25 }
0x1ace   :  { %v2908_v28 = vadd.f32 1e-06, %v2906_v27 }
0x1acf   :  { %v2905_v41 = vpop.xlane.xlu1 %2904 }
0x1ad0   :  { %3705 = vrsqrt.f32 %v2908_v28  ;;  %v2907_v42 = vmul.f32 0.03125, %v2905_v41 }
0x1ad2   :  { %v2909_v43 = vadd.f32 1e-06, %v2907_v42 }
0x1ad4   :  { %3707 = vrsqrt.f32 %v2909_v43 }
0x1add   :  { %v3706_v44 = vpop.eup %3705 }
0x1ade   :  { %v2912_v46 = vmul.f32 %v3706_v44, %v2896_v36 }
0x1ae0   :  { %v2920_v48 = vmul.f32 %v3193_v45, %v2912_v46 }
0x1ae1   :  { %v3708_v49 = vpop.eup %3707 }
0x1ae2   :  { %v2913_v50 = vmul.f32 %v3708_v49, %v2897_v37  ;;  %v2928_v51 = vadd.f32 %v3194_v47, %v2920_v48 }
0x1ae4   :  { %v2921_v52 = vmul.f32 %v3193_v45, %v2913_v50  ;;  %2930 = vst.msk [vmem:[#allocation6] sm:$0xff] %vm100_vm1, %v2928_v51 }
0x1ae6   :  { %v2929_v53 = vadd.f32 %v3194_v47, %v2921_v52 }
0x1ae8   :  { %2931 = vst.msk [vmem:[#allocation6 + $0x8] sm:$0xff] %vm100_vm1, %v2929_v53 }
0x1ae9   :  { %3760 = shalt.err (!%p3757_p0)
}
0x1aea   :  { %2967 = dma.vmem_to_hbm [thread:$0]  %s2962_s2, 256, %s4521_s23, [#allocation5], %s3778_s10, %s3778_s10, %s3779_s0  }
0x1aeb   :  { %3769 = dma.done.wait [#allocation3], 256  }
0x1aec   :  { %3770 = vsyncadd [#allocation3], 4294967040 }
0x1aed   :  { %3771 = dma.done.wait [#allocation5], 512  }
0x1aee   :  { %3772 = vsyncadd [#allocation5], 4294966784 }
0x1aef   :  { %2977 = vsyncpa [#allocation3], 1 }
0x1af0   :  { %2978 = vsyncpa [#allocation5], 1 }

</bundles_post_ra>
